<compile_context>
chip_gen: v7x
topology: tpu7x:2x2x1
jax: 0.10.0
libtpu: 0.0.40
codegen_flags: <defaults>
</compile_context>

<pallas_src>
import functools

import numpy as np
import jax
import jax.numpy as jnp
from jax import lax
from jax.experimental import pallas as pl
from jax.experimental.pallas import tpu as pltpu


def _round_up(x, m):
    return ((x + m - 1) // m) * m


def _slayer_rational_hat_kernel(x_ref, m_ref, c_ref, r_ref, o_ref, *,
                                point_dim, exponent, block_b):
    # x_ref: (Bt, Pt, D)  points  (P on sublanes -> per-d slice is a (Pt,1) column)
    # m_ref: (Bt, Pt)     not-dummy mask (lane-dense along P)
    # c_ref: (D, Nt)      centers, transposed (lane-dense along N)
    # r_ref: (1, Nt)      |radius| (lane-dense along N, abs hoisted to wrapper)
    # o_ref: (Bt, Nt)     output tile (lane-dense along N, f32 accumulator)

    @pl.when(pl.program_id(2) == 0)
    def _init():
        o_ref[...] = jnp.zeros_like(o_ref)

    ctr = c_ref[...].astype(jnp.float32)        # (D, Nt)
    rad = r_ref[...].astype(jnp.float32)        # (1, Nt)
    msk = m_ref[...].astype(jnp.float32)        # (Bt, Pt)

    def inv_pow(base):
        # 1 / base**exponent with a STATIC integer exponent (unrolled multiplies,
        # reciprocal instead of a pow -> no exp/log on the single EUP slot).
        if exponent <= 0:
            return jnp.ones_like(base)
        acc = base
        for _ in range(exponent - 1):
            acc = acc * base
        return pl.reciprocal(acc, approx=False)

    for b in range(block_b):                    # Bt is small & static -> unrolled
        pts = x_ref[b].astype(jnp.float32)      # (Pt, D)
        norm = jnp.zeros((pts.shape[0], ctr.shape[1]), dtype=jnp.float32)
        for d in range(point_dim):              # point_dim tiny & static (e.g. 2)
            xd = pts[:, d:d + 1]                # (Pt, 1) column
            cd = ctr[d:d + 1, :]                # (1, Nt) row
            norm = norm + jnp.abs(xd - cd)      # (Pt, Nt)

        positive = inv_pow(1.0 + norm)                      # (Pt, Nt)
        negative = inv_pow(1.0 + jnp.abs(rad - norm))       # (Pt, Nt)
        hat = positive - negative                           # (Pt, Nt)

        # Fused mask-multiply + P-reduction as an MXU matvec -> (1, Nt) row,
        # already in the lane-dense layout of the output tile.
        row = jnp.dot(msk[b:b + 1, :], hat,
                      preferred_element_type=jnp.float32,
                      precision=lax.Precision.HIGHEST)       # (1, Nt)
        o_ref[pl.ds(b, 1), :] += row


def slayer_rational_hat(batch, not_dummy, centers, radius, *, exponent=1,
                        block_b=8, block_n=512, block_p=512):
    """batch: (B, P, D), not_dummy: (B, P), centers: (N, D), radius: (N,)."""
    B, P, D = batch.shape
    N = centers.shape[0]

    # --- tile sizes (kept (8,128)-legal; padded problem dims divide the tiles)
    block_n = _round_up(block_n, 128)
    block_p = _round_up(block_p, 128)
    if B <= block_b:
        Bt = B
    else:
        Bt = _round_up(block_b, 8)
    B_pad = _round_up(B, Bt)
    Nt = min(block_n, _round_up(N, 128))
    N_pad = _round_up(N, Nt)
    Pt = min(block_p, _round_up(P, 128))
    P_pad = _round_up(P, Pt)

    f32 = jnp.float32
    batch_p = jnp.pad(batch.astype(f32), ((0, B_pad - B), (0, P_pad - P), (0, 0)))
    mask_p = jnp.pad(not_dummy.astype(f32), ((0, B_pad - B), (0, P_pad - P)))
    centers_t = jnp.pad(centers.astype(f32).T, ((0, 0), (0, N_pad - N)))       # (D, N_pad)
    radius_abs = jnp.pad(jnp.abs(radius.astype(f32)).reshape(1, N),
                         ((0, 0), (0, N_pad - N)))                             # (1, N_pad)

    grid = (B_pad // Bt, N_pad // Nt, P_pad // Pt)

    kernel = functools.partial(_slayer_rational_hat_kernel,
                               point_dim=D, exponent=int(exponent), block_b=Bt)

    out = pl.pallas_call(
        kernel,
        out_shape=jax.ShapeDtypeStruct((B_pad, N_pad), jnp.float32),
        grid_spec=pltpu.PrefetchScalarGridSpec(
            num_scalar_prefetch=0,
            grid=grid,
            in_specs=[
                pl.BlockSpec((Bt, Pt, D), lambda b, n, p: (b, p, 0)),  # points
                pl.BlockSpec((Bt, Pt),    lambda b, n, p: (b, p)),     # mask
                pl.BlockSpec((D, Nt),     lambda b, n, p: (0, n)),     # centers^T
                pl.BlockSpec((1, Nt),     lambda b, n, p: (0, n)),     # |radius|
            ],
            out_specs=pl.BlockSpec((Bt, Nt), lambda b, n, p: (b, n)),
        ),
        compiler_params=pltpu.CompilerParams(
            # B-tiles and N-tiles are independent (megacore-shardable); the
            # P axis is the reduction -> last, "arbitrary".
            dimension_semantics=("parallel", "parallel", "arbitrary"),
            # Headroom above default scoped VMEM, still < v7x's 64 MiB physical.
            vmem_limit_bytes=48 * 1024 * 1024,
        ),
    )(batch_p, mask_p, centers_t, radius_abs)

    return out[:B, :N]


def prepare_batch(list_of_point_sets, point_dim):
    """Plain-numpy analogue of chofer_torchex.prepare_batch (host-side glue)."""
    batch_size = len(list_of_point_sets)
    max_points = max(max(int(x.shape[0]) for x in list_of_point_sets), 1)
    batch = np.zeros((batch_size, max_points, point_dim), dtype=np.float32)
    not_dummy = np.zeros((batch_size, max_points), dtype=np.float32)
    for i, pts in enumerate(list_of_point_sets):
        n = int(pts.shape[0])
        if n > 0:
            batch[i, :n, :] = np.asarray(pts, dtype=np.float32)
            not_dummy[i, :n] = 1.0
    return jnp.asarray(batch), jnp.asarray(not_dummy), max_points, batch_size


def reference_forward(batch, not_dummy, centers, radius, exponent=1):
    # Pure-JAX reference mirroring the PyTorch module.
    diff = centers[None, :, None, :] - batch[:, None, :, :]   # (B,N,P,D)
    norm = jnp.sum(jnp.abs(diff), axis=3)                     # (B,N,P) L1
    rad = jnp.abs(radius)[None, :, None]
    pos = 1.0 / (1.0 + norm) ** exponent
    neg = 1.0 / (1.0 + jnp.abs(rad - norm)) ** exponent
    x = (pos - neg) * not_dummy[:, None, :]
    return jnp.sum(x, axis=2)


if __name__ == "__main__":
    key = jax.random.PRNGKey(0)

    n_elements = 32       # N
    point_dimension = 2   # D
    batch_size = 2        # B

    key, kc, kr = jax.random.split(key, 3)
    centers = jax.random.uniform(kc, (n_elements, point_dimension),
                                 dtype=jnp.float32)
    radius = jax.random.normal(kr, (n_elements,), dtype=jnp.float32)  # exercises abs()

    # Two multisets of different cardinality (ragged input -> prepared batch).
    key, k1, k2 = jax.random.split(key, 3)
    set_a = jax.random.uniform(k1, (16, point_dimension), dtype=jnp.float32)
    set_b = jax.random.uniform(k2, (9, point_dimension), dtype=jnp.float32)
    batch, not_dummy, max_points, bs = prepare_batch([set_a, set_b],
                                                     point_dimension)

    # exponent = 1 (module default) and exponent = 2 (pow path)
    for exponent in (1, 2):
        out = slayer_rational_hat(batch, not_dummy, centers, radius,
                                  exponent=exponent)
        out = jax.block_until_ready(out)
        ref = reference_forward(batch, not_dummy, centers, radius, exponent)
        assert out.shape == (bs, n_elements)
        np.testing.assert_allclose(np.asarray(out), np.asarray(ref),
                                   rtol=1e-5, atol=1e-5)

    print("KERNEL_OK")
</pallas_src>

<mosaic_0001>
module attributes {stable_mosaic.version = 11 : i64} {
  func.func @_slayer_rational_hat_kernel(%arg0: i32, %arg1: i32, %arg2: i32, %arg3: memref<2x128x2xf32, #tpu.memory_space<vmem>>, %arg4: memref<2x128xf32, #tpu.memory_space<vmem>>, %arg5: memref<2x128xf32, #tpu.memory_space<vmem>>, %arg6: memref<1x128xf32, #tpu.memory_space<vmem>>, %arg7: memref<2x128xf32, #tpu.memory_space<vmem>>) attributes {dimension_semantics = [#tpu.dimension_semantics<parallel>, #tpu.dimension_semantics<parallel>, #tpu.dimension_semantics<arbitrary>], iteration_bounds = array<i64: 1, 1, 1>, scalar_prefetch = 0 : i64, scratch_operands = 0 : i64, tpu.core_type = #tpu.core_type<tc>, window_params = [{transform_indices = @transform_0, window_bounds = array<i64: 2, 128, 2>}, {transform_indices = @transform_1, window_bounds = array<i64: 2, 128>}, {transform_indices = @transform_2, window_bounds = array<i64: 2, 128>}, {transform_indices = @transform_3, window_bounds = array<i64: 1, 128>}, {transform_indices = @transform_4, window_bounds = array<i64: 2, 128>}]} {
    %c0_i32 = arith.constant 0 : i32
    %0 = arith.cmpi eq, %arg2, %c0_i32 : i32
    %1 = arith.extui %0 : i1 to i32
    %c0_i32_0 = arith.constant 0 : i32
    %2 = arith.cmpi ne, %1, %c0_i32_0 : i32
    scf.if %2 {
      %cst_26 = arith.constant 0.000000e+00 : f32
      %70 = vector.broadcast %cst_26 : f32 to vector<2x128xf32>
      %c0_27 = arith.constant 0 : index
      %c0_28 = arith.constant 0 : index
      %71 = vector.load %arg7[%c0_27, %c0_28] : memref<2x128xf32, #tpu.memory_space<vmem>>, vector<2x128xf32>
      tpu.vector_store %arg7[%c0_27, %c0_28], %70 {strides = array<i32>} : memref<2x128xf32, #tpu.memory_space<vmem>>, vector<2x128xf32>,
    } else {
    }
    %c0 = arith.constant 0 : index
    %c0_1 = arith.constant 0 : index
    %3 = vector.load %arg5[%c0, %c0_1] : memref<2x128xf32, #tpu.memory_space<vmem>>, vector<2x128xf32>
    %c0_2 = arith.constant 0 : index
    %c0_3 = arith.constant 0 : index
    %4 = vector.load %arg6[%c0_2, %c0_3] : memref<1x128xf32, #tpu.memory_space<vmem>>, vector<1x128xf32>
    %c0_4 = arith.constant 0 : index
    %c0_5 = arith.constant 0 : index
    %5 = vector.load %arg4[%c0_4, %c0_5] : memref<2x128xf32, #tpu.memory_space<vmem>>, vector<2x128xf32>
    %c0_6 = arith.constant 0 : index
    %c0_7 = arith.constant 0 : index
    %c0_8 = arith.constant 0 : index
    %6 = vector.load %arg3[%c0_6, %c0_7, %c0_8] : memref<2x128x2xf32, #tpu.memory_space<vmem>>, vector<1x128x2xf32>
    %7 = vector.shape_cast %6 : vector<1x128x2xf32> to vector<128x2xf32>
    %cst = arith.constant 0.000000e+00 : f32
    %8 = vector.broadcast %cst : f32 to vector<128x128xf32>
    %9 = vector.extract_strided_slice %7 {offsets = [0, 0], sizes = [128, 1], strides = [1, 1]} : vector<128x2xf32> to vector<128x1xf32>
    %10 = vector.extract_strided_slice %3 {offsets = [0, 0], sizes = [1, 128], strides = [1, 1]} : vector<2x128xf32> to vector<1x128xf32>
    %11 = vector.broadcast %9 : vector<128x1xf32> to vector<128x128xf32>
    %12 = vector.broadcast %10 : vector<1x128xf32> to vector<128x128xf32>
    %13 = arith.subf %11, %12 : vector<128x128xf32>
    %14 = math.absf %13 : vector<128x128xf32>
    %15 = arith.addf %8, %14 : vector<128x128xf32>
    %16 = vector.extract_strided_slice %7 {offsets = [0, 1], sizes = [128, 1], strides = [1, 1]} : vector<128x2xf32> to vector<128x1xf32>
    %17 = vector.extract_strided_slice %3 {offsets = [1, 0], sizes = [1, 128], strides = [1, 1]} : vector<2x128xf32> to vector<1x128xf32>
    %18 = vector.broadcast %16 : vector<128x1xf32> to vector<128x128xf32>
    %19 = vector.broadcast %17 : vector<1x128xf32> to vector<128x128xf32>
    %20 = arith.subf %18, %19 : vector<128x128xf32>
    %21 = math.absf %20 : vector<128x128xf32>
    %22 = arith.addf %15, %21 : vector<128x128xf32>
    %cst_9 = arith.constant 1.000000e+00 : f32
    %23 = vector.broadcast %cst_9 : f32 to vector<128x128xf32>
    %24 = arith.addf %23, %22 : vector<128x128xf32>
    %25 = tpu.reciprocal %24 : vector<128x128xf32> -> vector<128x128xf32>
    %26 = vector.broadcast %4 : vector<1x128xf32> to vector<128x128xf32>
    %27 = arith.subf %26, %22 : vector<128x128xf32>
    %28 = math.absf %27 : vector<128x128xf32>
    %cst_10 = arith.constant 1.000000e+00 : f32
    %29 = vector.broadcast %cst_10 : f32 to vector<128x128xf32>
    %30 = arith.addf %29, %28 : vector<128x128xf32>
    %31 = tpu.reciprocal %30 : vector<128x128xf32> -> vector<128x128xf32>
    %32 = arith.subf %25, %31 : vector<128x128xf32>
    %33 = vector.extract_strided_slice %5 {offsets = [0, 0], sizes = [1, 128], strides = [1, 1]} : vector<2x128xf32> to vector<1x128xf32>
    %cst_11 = arith.constant dense<0.000000e+00> : vector<1x128xf32>
    %34 = tpu.matmul %33, %32, %cst_11 {dimension_numbers = #tpu.dot_dimension_numbers<[1], [0], [0], [1], [0, 0, 1, 1], [], []>, precision = #tpu.contract_precision<fp32>} : vector<1x128xf32>, vector<128x128xf32>, vector<1x128xf32> -> vector<1x128xf32>
    %c0_12 = arith.constant 0 : index
    %c0_13 = arith.constant 0 : index
    %35 = vector.load %arg7[%c0_12, %c0_13] : memref<2x128xf32, #tpu.memory_space<vmem>>, vector<1x128xf32>
    %36 = arith.addf %35, %34 : vector<1x128xf32>
    %c0_14 = arith.constant 0 : index
    %c0_15 = arith.constant 0 : index
    %37 = vector.load %arg7[%c0_14, %c0_15] : memref<2x128xf32, #tpu.memory_space<vmem>>, vector<1x128xf32>
    tpu.vector_store %arg7[%c0_14, %c0_15], %36 {strides = array<i32>} : memref<2x128xf32, #tpu.memory_space<vmem>>, vector<1x128xf32>,
    %c1 = arith.constant 1 : index
    %c0_16 = arith.constant 0 : index
    %c0_17 = arith.constant 0 : index
    %38 = vector.load %arg3[%c1, %c0_16, %c0_17] : memref<2x128x2xf32, #tpu.memory_space<vmem>>, vector<1x128x2xf32>
    %39 = vector.shape_cast %38 : vector<1x128x2xf32> to vector<128x2xf32>
    %cst_18 = arith.constant 0.000000e+00 : f32
    %40 = vector.broadcast %cst_18 : f32 to vector<128x128xf32>
    %41 = vector.extract_strided_slice %39 {offsets = [0, 0], sizes = [128, 1], strides = [1, 1]} : vector<128x2xf32> to vector<128x1xf32>
    %42 = vector.extract_strided_slice %3 {offsets = [0, 0], sizes = [1, 128], strides = [1, 1]} : vector<2x128xf32> to vector<1x128xf32>
    %43 = vector.broadcast %41 : vector<128x1xf32> to vector<128x128xf32>
    %44 = vector.broadcast %42 : vector<1x128xf32> to vector<128x128xf32>
    %45 = arith.subf %43, %44 : vector<128x128xf32>
    %46 = math.absf %45 : vector<128x128xf32>
    %47 = arith.addf %40, %46 : vector<128x128xf32>
    %48 = vector.extract_strided_slice %39 {offsets = [0, 1], sizes = [128, 1], strides = [1, 1]} : vector<128x2xf32> to vector<128x1xf32>
    %49 = vector.extract_strided_slice %3 {offsets = [1, 0], sizes = [1, 128], strides = [1, 1]} : vector<2x128xf32> to vector<1x128xf32>
    %50 = vector.broadcast %48 : vector<128x1xf32> to vector<128x128xf32>
    %51 = vector.broadcast %49 : vector<1x128xf32> to vector<128x128xf32>
    %52 = arith.subf %50, %51 : vector<128x128xf32>
    %53 = math.absf %52 : vector<128x128xf32>
    %54 = arith.addf %47, %53 : vector<128x128xf32>
    %cst_19 = arith.constant 1.000000e+00 : f32
    %55 = vector.broadcast %cst_19 : f32 to vector<128x128xf32>
    %56 = arith.addf %55, %54 : vector<128x128xf32>
    %57 = tpu.reciprocal %56 : vector<128x128xf32> -> vector<128x128xf32>
    %58 = vector.broadcast %4 : vector<1x128xf32> to vector<128x128xf32>
    %59 = arith.subf %58, %54 : vector<128x128xf32>
    %60 = math.absf %59 : vector<128x128xf32>
    %cst_20 = arith.constant 1.000000e+00 : f32
    %61 = vector.broadcast %cst_20 : f32 to vector<128x128xf32>
    %62 = arith.addf %61, %60 : vector<128x128xf32>
    %63 = tpu.reciprocal %62 : vector<128x128xf32> -> vector<128x128xf32>
    %64 = arith.subf %57, %63 : vector<128x128xf32>
    %65 = vector.extract_strided_slice %5 {offsets = [1, 0], sizes = [1, 128], strides = [1, 1]} : vector<2x128xf32> to vector<1x128xf32>
    %cst_21 = arith.constant dense<0.000000e+00> : vector<1x128xf32>
    %66 = tpu.matmul %65, %64, %cst_21 {dimension_numbers = #tpu.dot_dimension_numbers<[1], [0], [0], [1], [0, 0, 1, 1], [], []>, precision = #tpu.contract_precision<fp32>} : vector<1x128xf32>, vector<128x128xf32>, vector<1x128xf32> -> vector<1x128xf32>
    %c1_22 = arith.constant 1 : index
    %c0_23 = arith.constant 0 : index
    %67 = vector.load %arg7[%c1_22, %c0_23] : memref<2x128xf32, #tpu.memory_space<vmem>>, vector<1x128xf32>
    %68 = arith.addf %67, %66 : vector<1x128xf32>
    %c1_24 = arith.constant 1 : index
    %c0_25 = arith.constant 0 : index
    %69 = vector.load %arg7[%c1_24, %c0_25] : memref<2x128xf32, #tpu.memory_space<vmem>>, vector<1x128xf32>
    tpu.vector_store %arg7[%c1_24, %c0_25], %68 {strides = array<i32>} : memref<2x128xf32, #tpu.memory_space<vmem>>, vector<1x128xf32>,
    return
  }
  func.func @transform_0(%arg0: i32, %arg1: i32, %arg2: i32) -> (i32, i32, i32) {
    %c0_i32 = arith.constant 0 : i32
    %c0_i32_0 = arith.constant 0 : i32
    return %arg0, %arg2, %c0_i32 : i32, i32, i32
  }
  func.func @transform_1(%arg0: i32, %arg1: i32, %arg2: i32) -> (i32, i32) {
    %c0_i32 = arith.constant 0 : i32
    return %arg0, %arg2 : i32, i32
  }
  func.func @transform_2(%arg0: i32, %arg1: i32, %arg2: i32) -> (i32, i32) {
    %c0_i32 = arith.constant 0 : i32
    %c0_i32_0 = arith.constant 0 : i32
    return %c0_i32, %arg1 : i32, i32
  }
  func.func @transform_3(%arg0: i32, %arg1: i32, %arg2: i32) -> (i32, i32) {
    %c0_i32 = arith.constant 0 : i32
    %c0_i32_0 = arith.constant 0 : i32
    return %c0_i32, %arg1 : i32, i32
  }
  func.func @transform_4(%arg0: i32, %arg1: i32, %arg2: i32) -> (i32, i32) {
    %c0_i32 = arith.constant 0 : i32
    return %arg0, %arg1 : i32, i32
  }
}

</mosaic_0001>

<bundles_post_ra>
// kernel: tpu_custom_call.1
= control target key start
LH: loop header
LB: loop body
LE: loop exit
PB: predicated region body
PF: predicated region fallthrough
CT: control target
= control target key end

     0   :  { %v3206_v2 = vmov 1   ;;  %s4242_s0 = inlined_call_operand.vmem [shape: f32[2,128,2], index: 0, kind: input, shape index: {}]   ;;  %s4243_s1 = inlined_call_operand.vmem [shape: f32[2,128], index: 1, kind: input, shape index: {}]   ;;  %s4244_s2 = inlined_call_operand.vmem [shape: f32[2,128], index: 2, kind: input, shape index: {}]   ;;  %s4245_s3 = inlined_call_operand.vmem [shape: f32[1,128], index: 3, kind: input, shape index: {}]   ;;  %s4246_s4 = inlined_call_operand.hbm [shape: f32[2,128], index: 4, kind: output, shape index: {}]  }
   0x1   :  { %v28_v0 = vld [vmem:[%s4242_s0 + $0x10] sm:$0xff]  ;;  %v26_v1 = vld [vmem:[%s4242_s0] sm:$0xff]  ;;  %3019 = vset.pattern.permute.xlu0 %v3206_v2  ;;  %3017 = vset.pattern.permute.xlu1 %v3206_v2  ;;  %v27_v4 = vld [vmem:[%s4242_s0 + $0x8] sm:$0xff] }
   0x2   :  { %183 = vperm.xlu0 %3019, %v28_v0   ;;  %175 = vperm.xlu1 %3017, %v26_v1   ;;  %v32_v3 = vld [vmem:[%s4242_s0 + $0x30] sm:$0xff]  ;;  %v29_v6 = vld [vmem:[%s4242_s0 + $0x18] sm:$0xff] }
   0x3   :  { %v36_v5 = vld [vmem:[%s4242_s0 + $0x50] sm:$0xff] }
   0x6   :  { %199 = vperm.xlu0 %3019, %v32_v3   ;;  %179 = vperm.xlu1 %3017, %v27_v4  }
   0x7   :  { %9 = vsyncpa [#allocation3], 0  ;;  %v3207_v7 = vmov 0   ;;  %v30_v8 = vld [vmem:[%s4242_s0 + $0x20] sm:$0xff]  ;;  %v31_v9 = vld [vmem:[%s4242_s0 + $0x28] sm:$0xff]  ;;  %v3208_v15 = vmov 0.0|0.0   ;;  %v122_v30 = vlaneseq }
   0x8   :  { %v35_v10 = vld [vmem:[%s4242_s0 + $0x48] sm:$0xff]  ;;  %v33_v11 = vld [vmem:[%s4242_s0 + $0x38] sm:$0xff]  ;;  %v34_v13 = vld [vmem:[%s4242_s0 + $0x40] sm:$0xff]  ;;  %2723 = vmatprep.subr.bf16.mxu0 %v3208_v15  ;;  %2747 = vmatprep.subr.bf16.mxu1 %v3208_v15  ;;  %vm3209_vm0 = vmmov 0   ;;  %v4247_v31 = vmov 0.0  }
   0x9   :  { %v39_v12 = vld [vmem:[%s4242_s0 + $0x68] sm:$0xff]  ;;  %v40_v14 = vld [vmem:[%s4242_s0 + $0x70] sm:$0xff]  ;;  %v37_v17 = vld [vmem:[%s4242_s0 + $0x58] sm:$0xff]  ;;  %2335 = vmatprep.mubr.msk.f32.mxu0 %vm3209_vm0, %v4247_v31  ;;  %22 = vst [vmem:[#allocation2] sm:$0x3] %v4247_v31  ;;  %2370 = vmatprep.mubr.msk.f32.mxu1 %vm3209_vm0, %v4247_v31  ;;  %v123_v33 = vshrl.u32 %v122_v30, 7 }
   0xa   :  { %215 = vperm.xlu0 %3019, %v36_v5   ;;  %3018 = vset.pattern.permute.xlu1 %v3207_v7  ;;  %v2085_v16 = vld [vmem:[%s4242_s0 + $0x90] sm:$0xff]  ;;  %v2084_v20 = vld [vmem:[%s4242_s0 + $0x88] sm:$0xff]  ;;  %v38_v21 = vld [vmem:[%s4242_s0 + $0x60] sm:$0xff] }
   0xb   :  { %59 = vperm.xlu1 %3018, %v29_v6   ;;  %v2089_v18 = vld [vmem:[%s4242_s0 + $0xb0] sm:$0xff]  ;;  %v2088_v22 = vld [vmem:[%s4242_s0 + $0xa8] sm:$0xff]  ;;  %v41_v23 = vld [vmem:[%s4242_s0 + $0x78] sm:$0xff]  ;;  %v240_v36 = vsub.s32 1, %v123_v33  ;;  %v124_v40 = vsub.s32 0, %v123_v33 }
   0xc   :  { %v2093_v19 = vld [vmem:[%s4242_s0 + $0xd0] sm:$0xff]  ;;  %v3323_v24 = vld [vmem:[%s4242_s0 + $0xc8] sm:$0xff]  ;;  %v2083_v25 = vld [vmem:[%s4242_s0 + $0x80] sm:$0xff] }
   0xd   :  { %v3333_v26 = vld [vmem:[%s4242_s0 + $0xe8] sm:$0xff]  ;;  %v2097_v27 = vld [vmem:[%s4242_s0 + $0xf0] sm:$0xff]  ;;  %v2086_v28 = vld [vmem:[%s4242_s0 + $0x98] sm:$0xff] }
   0xe   :  { %3028 = vset.pattern.permute.xlu0 %v3207_v7  ;;  %v2087_v29 = vld [vmem:[%s4242_s0 + $0xa0] sm:$0xff]  ;;  %v2090_v32 = vld [vmem:[%s4242_s0 + $0xb8] sm:$0xff] }
   0xf   :  { %44 = vperm.xlu0 %3028, %v26_v1   ;;  %3020 = vset.pattern.permute.xlu1 %v3206_v2  ;;  %v23_v39 = vld [vmem:[%s4244_s2] sm:$0x3] }
  0x10   :  { %187 = vperm.xlu1 %3020, %v29_v6   ;;  %v3367_v41 = vrot.slane %v23_v39, %v240_v36  ;;  %v3371_v44 = vrot.slane %v23_v39, %v124_v40  ;;  %v2091_v45 = vld [vmem:[%s4242_s0 + $0xc0] sm:$0xff] }
  0x11   :  { %v3386_v56 = vld [vmem:[%s4245_s3] ss:$0 sm:$0xff] }
  0x13   :  { %49 = vperm.xlu0 %3028, %v27_v4  }
  0x14   :  { %3021 = vset.pattern.permute.xlu1 %v3207_v7 }
  0x15   :  { %64 = vperm.xlu1 %3021, %v30_v8  }
  0x17   :  { %54 = vperm.xlu0 %3028, %v28_v0  }
  0x19   :  { %3022 = vset.pattern.permute.xlu1 %v3206_v2 }
  0x1a   :  { %191 = vperm.xlu1 %3022, %v30_v8  }
  0x1b   :  { %69 = vperm.xlu0 %3028, %v31_v9  }
  0x1e   :  { %195 = vperm.xlu1 %3022, %v31_v9  }
  0x1f   :  { %74 = vperm.xlu0 %3028, %v32_v3  }
  0x22   :  { %3023 = vset.pattern.permute.xlu1 %v3207_v7 }
  0x23   :  { %89 = vperm.xlu0 %3028, %v35_v10   ;;  %79 = vperm.xlu1 %3023, %v33_v11  }
  0x27   :  { %94 = vperm.xlu0 %3028, %v36_v5   ;;  %3024 = vset.pattern.permute.xlu1 %v3206_v2 }
  0x28   :  { %203 = vperm.xlu1 %3024, %v33_v11  }
  0x2b   :  { %109 = vperm.xlu0 %3028, %v39_v12  }
  0x2c   :  { %3025 = vset.pattern.permute.xlu1 %v3207_v7 }
  0x2d   :  { %84 = vperm.xlu1 %3025, %v34_v13  }
  0x2f   :  { %114 = vperm.xlu0 %3028, %v40_v14  }
  0x31   :  { %3026 = vset.pattern.permute.xlu1 %v3206_v2 }
  0x32   :  { %207 = vperm.xlu1 %3026, %v34_v13  }
  0x33   :  { %3033 = vset.pattern.permute.xlu0 %v3206_v2 }
  0x34   :  { %231 = vperm.xlu0 %3033, %v40_v14  }
  0x36   :  { %211 = vperm.xlu1 %3026, %v35_v10  }
  0x38   :  { %1206 = vperm.xlu0 %3033, %v2085_v16  }
  0x3a   :  { %3027 = vset.pattern.permute.xlu1 %v3207_v7 }
  0x3b   :  { %99 = vperm.xlu1 %3027, %v37_v17  }
  0x3c   :  { %1222 = vperm.xlu0 %3033, %v2089_v18  }
  0x3f   :  { %3029 = vset.pattern.permute.xlu1 %v3206_v2 }
  0x40   :  { %1238 = vperm.xlu0 %3033, %v2093_v19   ;;  %219 = vperm.xlu1 %3029, %v37_v17  }
  0x44   :  { %3046 = vset.pattern.permute.xlu0 %v3207_v7  ;;  %3030 = vset.pattern.permute.xlu1 %v3207_v7 }
  0x45   :  { %1076 = vperm.xlu0 %3046, %v2084_v20   ;;  %104 = vperm.xlu1 %3030, %v38_v21  }
  0x49   :  { %1081 = vperm.xlu0 %3046, %v2085_v16   ;;  %3031 = vset.pattern.permute.xlu1 %v3206_v2  ;;  %v2094_v16 = vld [vmem:[%s4242_s0 + $0xd8] sm:$0xff] }
  0x4a   :  { %223 = vperm.xlu1 %3031, %v38_v21  }
  0x4d   :  { %1096 = vperm.xlu0 %3046, %v2088_v22  }
  0x4e   :  { %227 = vperm.xlu1 %3031, %v39_v12  }
  0x51   :  { %1101 = vperm.xlu0 %3046, %v2089_v18  }
  0x52   :  { %3032 = vset.pattern.permute.xlu1 %v3207_v7 }
  0x53   :  { %119 = vperm.xlu1 %3032, %v41_v23  }
  0x55   :  { %1116 = vperm.xlu0 %3046, %v3323_v24  }
  0x57   :  { %3034 = vset.pattern.permute.xlu1 %v3206_v2 }
  0x58   :  { %235 = vperm.xlu1 %3034, %v41_v23  }
  0x59   :  { %1121 = vperm.xlu0 %3046, %v2093_v19  }
  0x5c   :  { %3035 = vset.pattern.permute.xlu1 %v3207_v7 }
  0x5d   :  { %1071 = vperm.xlu1 %3035, %v2083_v25   ;;  %1136 = vperm.xlu0 %3046, %v3333_v26  }
  0x61   :  { %3036 = vset.pattern.permute.xlu1 %v3206_v2  ;;  %1141 = vperm.xlu0 %3046, %v2097_v27  }
  0x62   :  { %1198 = vperm.xlu1 %3036, %v2083_v25  }
  0x65   :  { %3051 = vset.pattern.permute.xlu0 %v3206_v2 }
  0x66   :  { %1202 = vperm.xlu1 %3036, %v2084_v20   ;;  %1254 = vperm.xlu0 %3051, %v2097_v27  }
  0x6a   :  { %3037 = vset.pattern.permute.xlu1 %v3207_v7 }
  0x6b   :  { %1086 = vperm.xlu1 %3037, %v2086_v28  }
  0x6f   :  { %3038 = vset.pattern.permute.xlu1 %v3206_v2 }
  0x70   :  { %1210 = vperm.xlu1 %3038, %v2086_v28  }
  0x74   :  { %3039 = vset.pattern.permute.xlu1 %v3207_v7 }
  0x75   :  { %1091 = vperm.xlu1 %3039, %v2087_v29  }
  0x79   :  { %3040 = vset.pattern.permute.xlu1 %v3206_v2 }
  0x7a   :  { %1214 = vperm.xlu1 %3040, %v2087_v29  }
  0x7e   :  { %1218 = vperm.xlu1 %3040, %v2088_v22  }
  0x81   :  { %v176_v34 = vpop.permute.xlu1 %175  ;;  %v184_v35 = vpop.permute.xlu0 %183 }
  0x82   :  { %3041 = vset.pattern.permute.xlu1 %v3207_v7  ;;  %v242_v46 = vsub.f32 %v176_v34, %v3367_v41  ;;  %v244_v59 = vsub.f32 %v184_v35, %v3367_v41 }
  0x83   :  { %1106 = vperm.xlu1 %3041, %v2090_v32  }
  0x84   :  { %v258_v52 = vand.u32 2147483647, %v242_v46  ;;  %v260_v8 = vand.u32 2147483647, %v244_v59 }
  0x85   :  { %v180_v37 = vpop.permute.xlu1 %179  ;;  %v3361_v38 = vpop.permute.xlu0 %199 }
  0x86   :  { %v243_v53 = vsub.f32 %v180_v37, %v3367_v41  ;;  %v248_v11 = vsub.f32 %v3361_v38, %v3367_v41 }
  0x87   :  { %3042 = vset.pattern.permute.xlu1 %v3206_v2 }
  0x88   :  { %1226 = vperm.xlu1 %3042, %v2090_v32   ;;  %v259_v0 = vand.u32 2147483647, %v243_v53  ;;  %v264_v33 = vand.u32 2147483647, %v248_v11 }
  0x89   :  { %v3369_v42 = vpop.permute.xlu0 %215 }
  0x8a   :  { %v60_v43 = vpop.permute.xlu1 %59 }
  0x8b   :  { %v129_v47 = vsub.f32 %v60_v43, %v3371_v44 }
  0x8c   :  { %3043 = vset.pattern.permute.xlu1 %v3207_v7 }
  0x8d   :  { %1111 = vperm.xlu1 %3043, %v2091_v45   ;;  %v145_v55 = vand.u32 2147483647, %v129_v47 }
  0x8e   :  { %v45_v48 = vpop.permute.xlu0 %44 }
  0x8f   :  { %v126_v49 = vsub.f32 %v45_v48, %v3371_v44  ;;  %v188_v50 = vpop.permute.xlu1 %187 }
  0x90   :  { %v245_v51 = vsub.f32 %v188_v50, %v3367_v41 }
  0x91   :  { %v142_v54 = vand.u32 2147483647, %v126_v49  ;;  %3044 = vset.pattern.permute.xlu1 %v3206_v2 }
  0x92   :  { %v261_v57 = vand.u32 2147483647, %v245_v51  ;;  %v50_v58 = vpop.permute.xlu0 %49  ;;  %1230 = vperm.xlu1 %3044, %v2091_v45  }
  0x93   :  { %v274_v60 = vadd.f32 %v258_v52, %v142_v54  ;;  %v127_v61 = vsub.f32 %v50_v58, %v3371_v44  ;;  %v252_v58 = vsub.f32 %v3369_v42, %v3367_v41 }
  0x94   :  { %v277_v62 = vadd.f32 %v261_v57, %v145_v55  ;;  %v65_v63 = vpop.permute.xlu1 %64  ;;  %v2095_v55 = vld [vmem:[%s4242_s0 + $0xe0] sm:$0xff] }
  0x95   :  { %v290_v1 = vadd.f32 1.0, %v274_v60  ;;  %v328_v3 = vsub.f32 %v3386_v56, %v274_v60  ;;  %v143_v4 = vand.u32 2147483647, %v127_v61  ;;  %v130_v13 = vsub.f32 %v65_v63, %v3371_v44 }
  0x96   :  { %v331_v5 = vsub.f32 %v3386_v56, %v277_v62  ;;  %v55_v6 = vpop.permute.xlu0 %54  ;;  %1234 = vperm.xlu1 %3044, %v3323_v24   ;;  %v293_v18 = vadd.f32 1.0, %v277_v62 }
  0x97   :  { %v344_v9 = vand.u32 2147483647, %v328_v3  ;;  %v275_v10 = vadd.f32 %v259_v0, %v143_v4  ;;  %v128_v14 = vsub.f32 %v55_v6, %v3371_v44  ;;  %3053 = vrcp.f32 %v290_v1 }
  0x98   :  { %v347_v12 = vand.u32 2147483647, %v331_v5  ;;  %v146_v29 = vand.u32 2147483647, %v130_v13 }
  0x99   :  { %v360_v17 = vadd.f32 1.0, %v344_v9  ;;  %v329_v19 = vsub.f32 %v3386_v56, %v275_v10  ;;  %v192_v20 = vpop.permute.xlu1 %191  ;;  %v291_v22 = vadd.f32 1.0, %v275_v10  ;;  %v144_v23 = vand.u32 2147483647, %v128_v14 }
  0x9a   :  { %v363_v21 = vadd.f32 1.0, %v347_v12  ;;  %v246_v24 = vsub.f32 %v192_v20, %v3367_v41  ;;  %v70_v25 = vpop.permute.xlu0 %69  ;;  %3045 = vset.pattern.permute.xlu1 %v3207_v7 }
  0x9b   :  { %3055 = vrcp.f32 %v360_v17  ;;  %v345_v27 = vand.u32 2147483647, %v329_v19  ;;  %v131_v28 = vsub.f32 %v70_v25, %v3371_v44  ;;  %1126 = vperm.xlu1 %3045, %v2094_v16   ;;  %v276_v30 = vadd.f32 %v260_v8, %v144_v23 }
  0x9c   :  { %3057 = vrcp.f32 %v363_v21  ;;  %v262_v32 = vand.u32 2147483647, %v246_v24  ;;  %v268_v8 = vand.u32 2147483647, %v252_v58 }
  0x9d   :  { %3059 = vrcp.f32 %v293_v18  ;;  %v361_v34 = vadd.f32 1.0, %v345_v27  ;;  %v196_v35 = vpop.permute.xlu1 %195  ;;  %v330_v36 = vsub.f32 %v3386_v56, %v276_v30  ;;  %v292_v40 = vadd.f32 1.0, %v276_v30 }
  0x9e   :  { %3061 = vrcp.f32 %v291_v22  ;;  %v278_v37 = vadd.f32 %v262_v32, %v146_v29  ;;  %v247_v38 = vsub.f32 %v196_v35, %v3367_v41  ;;  %v75_v39 = vpop.permute.xlu0 %74  ;;  %v147_v43 = vand.u32 2147483647, %v131_v28 }
  0x9f   :  { %3063 = vrcp.f32 %v361_v34  ;;  %v132_v45 = vsub.f32 %v75_v39, %v3371_v44  ;;  %3047 = vset.pattern.permute.xlu1 %v3206_v2  ;;  %v346_v46 = vand.u32 2147483647, %v330_v36 }
  0xa0   :  { %v332_v47 = vsub.f32 %v3386_v56, %v278_v37  ;;  %1242 = vperm.xlu1 %3047, %v2094_v16   ;;  %v294_v48 = vadd.f32 1.0, %v278_v37  ;;  %v263_v49 = vand.u32 2147483647, %v247_v38  ;;  %3065 = vrcp.f32 %v292_v40 }
  0xa1   :  { %v148_v50 = vand.u32 2147483647, %v132_v45  ;;  %v362_v51 = vadd.f32 1.0, %v346_v46  ;;  %v3054_v57 = vpop.eup %3053 }
  0xa2   :  { %v348_v52 = vand.u32 2147483647, %v332_v47  ;;  %v3409_v53 = vpop.permute.xlu0 %89  ;;  %v80_v54 = vpop.permute.xlu1 %79  ;;  %v279_v59 = vadd.f32 %v263_v49, %v147_v43 }
  0xa3   :  { %v280_v60 = vadd.f32 %v264_v33, %v148_v50  ;;  %3067 = vrcp.f32 %v362_v51  ;;  %v133_v4 = vsub.f32 %v80_v54, %v3371_v44  ;;  %v135_v51 = vsub.f32 %v3409_v53, %v3371_v44 }
  0xa4   :  { %v364_v61 = vadd.f32 1.0, %v348_v52  ;;  %3048 = vset.pattern.permute.xlu1 %v3207_v7  ;;  %3069 = vrcp.f32 %v294_v48  ;;  %v333_v63 = vsub.f32 %v3386_v56, %v279_v59  ;;  %v295_v3 = vadd.f32 1.0, %v279_v59 }
  0xa5   :  { %v3056_v62 = vpop.eup %3055  ;;  %v334_v0 = vsub.f32 %v3386_v56, %v280_v60  ;;  %1131 = vperm.xlu1 %3048, %v2095_v55   ;;  %v149_v21 = vand.u32 2147483647, %v133_v4  ;;  %v296_v24 = vadd.f32 1.0, %v280_v60 }
  0xa6   :  { %v3058_v1 = vpop.eup %3057  ;;  %3071 = vrcp.f32 %v364_v61  ;;  %v95_v42 = vpop.permute.xlu0 %94  ;;  %v392_v5 = vsub.f32 %v3054_v57, %v3056_v62  ;;  %v349_v9 = vand.u32 2147483647, %v333_v63 }
  0xa7   :  { %v3060_v6 = vpop.eup %3059  ;;  %v136_v10 = vsub.f32 %v95_v42, %v3371_v44  ;;  %v204_v11 = vpop.permute.xlu1 %203  ;;  %v350_v19 = vand.u32 2147483647, %v334_v0  ;;  %3073 = vrcp.f32 %v295_v3 }
  0xa8   :  { %v3062_v12 = vpop.eup %3061  ;;  %v249_v13 = vsub.f32 %v204_v11, %v3367_v41  ;;  %v409_v14 = vand.u32 4294901760, %v392_v5  ;;  %v395_v16 = vsub.f32 %v3060_v6, %v3058_v1  ;;  %v365_v18 = vadd.f32 1.0, %v349_v9 }
  0xa9   :  { %v3064_v17 = vpop.eup %3063  ;;  %v152_v20 = vand.u32 2147483647, %v136_v10  ;;  %3049 = vset.pattern.permute.xlu1 %v3206_v2  ;;  %v366_v34 = vadd.f32 1.0, %v350_v19 }
  0xaa   :  { %v265_v22 = vand.u32 2147483647, %v249_v13  ;;  %1246 = vperm.xlu1 %3049, %v2095_v55   ;;  %v393_v23 = vsub.f32 %v3062_v12, %v3064_v17  ;;  %3075 = vrcp.f32 %v365_v18  ;;  %v418_v27 = vand.u32 4294901760, %v395_v16  ;;  %v3066_v33 = vpop.eup %3065  ;;  %v3427_v35 = vpop.permute.xlu0 %109 }
  0xab   :  { %v3423_v25 = vadd.f32 %v268_v8, %v152_v20  ;;  %v3425_v32 = vsub.f32 %v392_v5, %v409_v14  ;;  %3077 = vrcp.f32 %v296_v24 }
  0xac   :  { %v281_v28 = vadd.f32 %v265_v22, %v149_v21  ;;  %v85_v29 = vpop.permute.xlu1 %84  ;;  %v412_v30 = vand.u32 4294901760, %v393_v23  ;;  %v3437_v45 = vsub.f32 %v395_v16, %v418_v27  ;;  %3079 = vrcp.f32 %v366_v34 }
  0xad   :  { %v3068_v36 = vpop.eup %3067  ;;  %v338_v43 = vsub.f32 %v3386_v56, %v3423_v25  ;;  %v134_v48 = vsub.f32 %v85_v29, %v3371_v44  ;;  %v502_v50 = vand.u32 4294901760, %v3425_v32  ;;  %v151_v22 = vand.u32 2147483647, %v135_v51 }
  0xae   :  { %v335_v37 = vsub.f32 %v3386_v56, %v281_v28  ;;  %1250 = vperm.xlu1 %3049, %v3333_v26   ;;  %v3431_v38 = vpack.c.bf16 %v412_v30, %v409_v14  ;;  %v3433_v39 = vsub.f32 %v393_v23, %v412_v30  ;;  %v3070_v40 = vpop.eup %3069  ;;  %v2098_v26 = vld [vmem:[%s4242_s0 + $0xf8] sm:$0xff]  ;;  %v394_v49 = vsub.f32 %v3066_v33, %v3068_v36  ;;  %v3454_v63 = vpop.permute.xlu0 %114 }
  0xaf   :  { %v503_v60 = vsub.f32 %v3425_v32, %v502_v50  ;;  %v354_v61 = vand.u32 2147483647, %v338_v43  ;;  %v297_v62 = vadd.f32 1.0, %v281_v28  ;;  %v150_v3 = vand.u32 2147483647, %v134_v48 }
  0xb0   :  { %v3072_v46 = vpop.eup %3071  ;;  %v351_v47 = vand.u32 2147483647, %v335_v37  ;;  %2725 = vmatpush3.bf16.msra.mxu0 %v3431_v38  ;;  %v509_v54 = vand.u32 4294901760, %v3433_v39  ;;  %v415_v59 = vand.u32 4294901760, %v394_v49  ;;  %v300_v36 = vadd.f32 1.0, %v3423_v25 }
  0xb1   :  { %v208_v52 = vpop.permute.xlu1 %207  ;;  %2726 = vmatprep.subr.bf16.mxu0 %v3208_v15  ;;  %v396_v55 = vsub.f32 %v3070_v40, %v3072_v46  ;;  %v3074_v1 = vpop.eup %3073  ;;  %v504_v9 = vand.u32 4294901760, %v503_v60  ;;  %v370_v18 = vadd.f32 1.0, %v354_v61  ;;  %v140_v37 = vsub.f32 %v3454_v63, %v3371_v44 }
  0xb2   :  { %v367_v57 = vadd.f32 1.0, %v351_v47  ;;  %v250_v58 = vsub.f32 %v208_v52, %v3367_v41  ;;  %3050 = vset.pattern.permute.xlu1 %v3207_v7  ;;  %v510_v53 = vsub.f32 %v3433_v39, %v509_v54  ;;  %v3459_v42 = vpack.c.bf16 %v418_v27, %v415_v59 }
  0xb3   :  { %1146 = vperm.xlu1 %3050, %v2098_v26   ;;  %v421_v0 = vand.u32 4294901760, %v396_v55  ;;  %v523_v7 = vand.u32 4294901760, %v3437_v45  ;;  %v3462_v6 = vsub.f32 %v394_v49, %v415_v59  ;;  %v232_v24 = vpop.permute.xlu0 %231  ;;  %v156_v61 = vand.u32 2147483647, %v140_v37 }
  0xb4   :  { %v266_v4 = vand.u32 2147483647, %v250_v58  ;;  %v3076_v5 = vpop.eup %3075  ;;  %3081 = vrcp.f32 %v367_v57  ;;  %v511_v10 = vand.u32 4294901760, %v510_v53  ;;  %2728 = vmatpush3.bf16.msra.mxu0 %v3459_v42  ;;  %v256_v47 = vsub.f32 %v232_v24, %v3367_v41 }
  0xb5   :  { %v212_v8 = vpop.permute.xlu1 %211  ;;  %v397_v13 = vsub.f32 %v3074_v1, %v3076_v5  ;;  %v3466_v14 = vsub.f32 %v396_v55, %v421_v0  ;;  %3083 = vrcp.f32 %v297_v62  ;;  %2729 = vmatprep.subr.bf16.mxu0 %v3208_v15  ;;  %v516_v17 = vand.u32 4294901760, %v3462_v6  ;;  %v3078_v21 = vpop.eup %3077 }
  0xb6   :  { %v282_v11 = vadd.f32 %v266_v4, %v150_v3  ;;  %v251_v12 = vsub.f32 %v212_v8, %v3367_v41  ;;  %v2748_v16 = vpack.c.bf16 %v511_v10, %v504_v9  ;;  %v3080_v34 = vpop.eup %3079  ;;  %3085 = vrcp.f32 %v370_v18 }
  0xb7   :  { %3052 = vset.pattern.permute.xlu1 %v3206_v2  ;;  %v424_v27 = vand.u32 4294901760, %v397_v13  ;;  %v524_v2 = vsub.f32 %v3437_v45, %v523_v7  ;;  %v517_v30 = vsub.f32 %v3462_v6, %v516_v17  ;;  %v530_v33 = vand.u32 4294901760, %v3466_v14 }
  0xb8   :  { %v336_v19 = vsub.f32 %v3386_v56, %v282_v11  ;;  %v267_v20 = vand.u32 2147483647, %v251_v12  ;;  %1258 = vperm.xlu1 %3052, %v2098_v26   ;;  %v298_v23 = vadd.f32 1.0, %v282_v11  ;;  %2749 = vmatpush3.bf16.msra.mxu1 %v2748_v16  ;;  %v272_v62 = vand.u32 2147483647, %v256_v47 }
  0xb9   :  { %2750 = vmatprep.subr.bf16.mxu1 %v3208_v15  ;;  %v3483_v43 = vpack.c.bf16 %v424_v27, %v421_v0  ;;  %v3486_v48 = vsub.f32 %v397_v13, %v424_v27  ;;  %v525_v25 = vand.u32 4294901760, %v524_v2  ;;  %v518_v52 = vand.u32 4294901760, %v517_v30 }
  0xba   :  { %v352_v28 = vand.u32 2147483647, %v336_v19  ;;  %v100_v29 = vpop.permute.xlu1 %99  ;;  %v283_v40 = vadd.f32 %v267_v20, %v151_v22  ;;  %3087 = vrcp.f32 %v298_v23  ;;  %v531_v55 = vsub.f32 %v3466_v14, %v530_v33 }
  0xbb   :  { %v137_v49 = vsub.f32 %v100_v29, %v3371_v44  ;;  %2731 = vmatpush3.bf16.msra.mxu0 %v3483_v43  ;;  %v537_v60 = vand.u32 4294901760, %v3486_v48  ;;  %v2751_v63 = vpack.c.bf16 %v525_v25, %v518_v52  ;;  %v398_v5 = vsub.f32 %v3078_v21, %v3080_v34 }
  0xbc   :  { %v368_v46 = vadd.f32 1.0, %v352_v28  ;;  %v337_v26 = vsub.f32 %v3386_v56, %v283_v40  ;;  %v299_v51 = vadd.f32 1.0, %v283_v40  ;;  %2732 = vmatprep.subr.bf16.mxu0 %v3208_v15  ;;  %v532_v9 = vand.u32 4294901760, %v531_v55 }
  0xbd   :  { %v153_v3 = vand.u32 2147483647, %v137_v49  ;;  %v538_v4 = vsub.f32 %v3486_v48, %v537_v60  ;;  %2752 = vmatpush3.bf16.msra.mxu1 %v2751_v63  ;;  %v427_v12 = vand.u32 4294901760, %v398_v5  ;;  %v2772_v13 = vpack.c.bf16 %v3433_v39, %v3425_v32 }
  0xbe   :  { %3089 = vrcp.f32 %v368_v46  ;;  %v3082_v57 = vpop.eup %3081  ;;  %v353_v58 = vand.u32 2147483647, %v337_v26  ;;  %2753 = vmatprep.subr.bf16.mxu1 %v3208_v15  ;;  %v288_v29 = vadd.f32 %v272_v62, %v156_v61  ;;  %v139_v52 = vsub.f32 %v3427_v35, %v3371_v44 }
  0xbf   :  { %3091 = vrcp.f32 %v300_v36  ;;  %v220_v59 = vpop.permute.xlu1 %219  ;;  %v3084_v0 = vpop.eup %3083  ;;  %v539_v11 = vand.u32 4294901760, %v538_v4  ;;  %v3505_v22 = vsub.f32 %v398_v5, %v427_v12 }
  0xc0   :  { %v253_v53 = vsub.f32 %v220_v59, %v3367_v41  ;;  %v369_v1 = vadd.f32 1.0, %v353_v58  ;;  %3093 = vrcp.f32 %v299_v51  ;;  %v399_v10 = vsub.f32 %v3084_v0, %v3082_v57  ;;  %v3086_v23 = vpop.eup %3085 }
  0xc1   :  { %v2754_v21 = vpack.c.bf16 %v539_v11, %v532_v9  ;;  %v544_v34 = vand.u32 4294901760, %v3505_v22  ;;  %v342_v59 = vsub.f32 %v3386_v56, %v288_v29 }
  0xc2   :  { %v269_v8 = vand.u32 2147483647, %v253_v53  ;;  %3095 = vrcp.f32 %v369_v1  ;;  %v430_v19 = vand.u32 4294901760, %v399_v10 }
  0xc3   :  { %2755 = vmatpush3.bf16.msra.mxu1 %v2754_v21  ;;  %v545_v25 = vsub.f32 %v3505_v22, %v544_v34 }
  0xc4   :  { %v285_v16 = vadd.f32 %v269_v8, %v153_v3  ;;  %v105_v18 = vpop.permute.xlu1 %104  ;;  %v3508_v27 = vpack.c.bf16 %v430_v19, %v427_v12  ;;  %v3510_v2 = vsub.f32 %v399_v10, %v430_v19  ;;  %v3088_v28 = vpop.eup %3087  ;;  %2756 = vmatprep.subr.bf16.mxu1 %v3208_v15  ;;  %v155_v12 = vand.u32 2147483647, %v139_v52 }
  0xc5   :  { %v138_v30 = vsub.f32 %v105_v18, %v3371_v44  ;;  %v546_v1 = vand.u32 4294901760, %v545_v25  ;;  %v358_v18 = vand.u32 2147483647, %v342_v59 }
  0xc6   :  { %v339_v24 = vsub.f32 %v3386_v56, %v285_v16  ;;  %2734 = vmatpush3.bf16.msra.mxu0 %v3508_v27  ;;  %v551_v40 = vand.u32 4294901760, %v3510_v2  ;;  %v301_v26 = vadd.f32 1.0, %v285_v16  ;;  %v304_v16 = vadd.f32 1.0, %v288_v29 }
  0xc7   :  { %2735 = vmatprep.subr.bf16.mxu0 %v3208_v15  ;;  %v154_v61 = vand.u32 2147483647, %v138_v30 }
  0xc8   :  { %v3090_v36 = vpop.eup %3089  ;;  %v355_v37 = vand.u32 2147483647, %v339_v24  ;;  %v552_v58 = vsub.f32 %v3510_v2, %v551_v40 }
  0xc9   :  { %v3092_v47 = vpop.eup %3091  ;;  %v224_v49 = vpop.permute.xlu1 %223  ;;  %v400_v51 = vsub.f32 %v3088_v28, %v3090_v36 }
  0xca   :  { %v371_v55 = vadd.f32 1.0, %v355_v37  ;;  %v254_v57 = vsub.f32 %v224_v49, %v3367_v41  ;;  %v3530_v63 = vsub.f32 %v3092_v47, %v3086_v23  ;;  %v3094_v53 = vpop.eup %3093  ;;  %v553_v3 = vand.u32 4294901760, %v552_v58 }
  0xcb   :  { %v433_v62 = vand.u32 4294901760, %v400_v51  ;;  %v374_v49 = vadd.f32 1.0, %v358_v18 }
  0xcc   :  { %3097 = vrcp.f32 %v371_v55  ;;  %v270_v0 = vand.u32 2147483647, %v254_v57  ;;  %v3096_v4 = vpop.eup %3095  ;;  %v2757_v10 = vpack.c.bf16 %v553_v3, %v546_v1  ;;  %v439_v24 = vand.u32 4294901760, %v3530_v63 }
  0xcd   :  { %3099 = vrcp.f32 %v301_v26  ;;  %v228_v35 = vpop.permute.xlu1 %227  ;;  %v3532_v5 = vsub.f32 %v400_v51, %v433_v62  ;;  %v401_v11 = vsub.f32 %v3094_v53, %v3096_v4 }
  0xce   :  { %v286_v8 = vadd.f32 %v270_v0, %v154_v61  ;;  %v255_v9 = vsub.f32 %v228_v35, %v3367_v41  ;;  %2758 = vmatpush3.bf16.msra.mxu1 %v2757_v10  ;;  %3101 = vrcp.f32 %v304_v16  ;;  %v3546_v52 = vsub.f32 %v3530_v63, %v439_v24  ;;  %v3554_v0 = vpop.permute.xlu0 %1206 }
  0xcf   :  { %v436_v23 = vand.u32 4294901760, %v401_v11  ;;  %2759 = vmatprep.subr.bf16.mxu1 %v3208_v15  ;;  %v558_v30 = vand.u32 4294901760, %v3532_v5  ;;  %v1263_v39 = vsub.f32 %v3554_v0, %v3367_v41 }
  0xd0   :  { %v340_v19 = vsub.f32 %v3386_v56, %v286_v8  ;;  %v271_v21 = vand.u32 2147483647, %v255_v9  ;;  %v302_v28 = vadd.f32 1.0, %v286_v8  ;;  %v572_v10 = vand.u32 4294901760, %v3546_v52 }
  0xd1   :  { %v3539_v26 = vpack.c.bf16 %v436_v23, %v433_v62  ;;  %v3541_v29 = vsub.f32 %v401_v11, %v436_v23  ;;  %v559_v58 = vsub.f32 %v3532_v5, %v558_v30 }
  0xd2   :  { %v356_v36 = vand.u32 2147483647, %v340_v19  ;;  %v287_v37 = vadd.f32 %v271_v21, %v155_v12  ;;  %v120_v47 = vpop.permute.xlu1 %119  ;;  %3103 = vrcp.f32 %v302_v28 }
  0xd3   :  { %2737 = vmatpush3.bf16.msra.mxu0 %v3539_v26  ;;  %v141_v57 = vsub.f32 %v120_v47, %v3371_v44  ;;  %v565_v62 = vand.u32 4294901760, %v3541_v29  ;;  %v560_v9 = vand.u32 4294901760, %v559_v58 }
  0xd4   :  { %v372_v25 = vadd.f32 1.0, %v356_v36  ;;  %v341_v51 = vsub.f32 %v3386_v56, %v287_v37  ;;  %v303_v55 = vadd.f32 1.0, %v287_v37  ;;  %2738 = vmatprep.subr.bf16.mxu0 %v3208_v15  ;;  %v3567_v36 = vpop.permute.xlu0 %1222 }
  0xd5   :  { %v566_v4 = vsub.f32 %v3541_v29, %v565_v62  ;;  %v157_v8 = vand.u32 2147483647, %v141_v57 }
  0xd6   :  { %v3098_v59 = vpop.eup %3097  ;;  %3105 = vrcp.f32 %v372_v25  ;;  %v357_v61 = vand.u32 2147483647, %v341_v51 }
  0xd7   :  { %v3100_v53 = vpop.eup %3099  ;;  %3107 = vrcp.f32 %v374_v49  ;;  %v236_v63 = vpop.permute.xlu1 %235  ;;  %v567_v12 = vand.u32 4294901760, %v566_v4  ;;  %v573_v49 = vsub.f32 %v3546_v52, %v572_v10 }
  0xd8   :  { %v373_v1 = vadd.f32 1.0, %v357_v61  ;;  %v257_v3 = vsub.f32 %v236_v63, %v3367_v41  ;;  %v403_v35 = vsub.f32 %v3100_v53, %v3098_v59  ;;  %3109 = vrcp.f32 %v303_v55  ;;  %v3102_v37 = vpop.eup %3101  ;;  %v3581_v63 = vld [vmem:[%s4243_s1] sm:$0x3] }
  0xd9   :  { %v2760_v19 = vpack.c.bf16 %v567_v12, %v560_v9 }
  0xda   :  { %3111 = vrcp.f32 %v373_v1  ;;  %v273_v11 = vand.u32 2147483647, %v257_v3  ;;  %v442_v16 = vand.u32 4294901760, %v403_v35  ;;  %v574_v3 = vand.u32 4294901760, %v573_v49 }
  0xdb   :  { %2761 = vmatpush3.bf16.msra.mxu1 %v2760_v19  ;;  %v3598_v19 = vpack.c.bf16 %v523_v7, %v516_v17 }
  0xdc   :  { %v289_v18 = vadd.f32 %v273_v11, %v157_v8  ;;  %v3561_v21 = vpop.permute.xlu1 %1071  ;;  %v3563_v23 = vpack.c.bf16 %v442_v16, %v439_v24  ;;  %v3565_v28 = vsub.f32 %v403_v35, %v442_v16  ;;  %v3104_v51 = vpop.eup %3103  ;;  %2762 = vmatprep.subr.bf16.mxu1 %v3208_v15  ;;  %v3589_v11 = vpack.c.bf16 %v509_v54, %v502_v50 }
  0xdd   :  { %v3583_v8 = vpop.permute.xlu0 %1238  ;;  %v3608_v50 = vpack.c.bf16 %v537_v60, %v530_v33  ;;  %v3614_v54 = vpack.c.bf16 %v551_v40, %v544_v34 }
  0xde   :  { %v343_v47 = vsub.f32 %v3386_v56, %v289_v18  ;;  %2740 = vmatpush3.bf16.msra.mxu0 %v3563_v23  ;;  %v579_v25 = vand.u32 4294901760, %v3565_v28  ;;  %v305_v55 = vadd.f32 1.0, %v289_v18  ;;  %v3592_v18 = vand.u32 4294901760, %v3581_v63 }
  0xdf   :  { %2741 = vmatprep.subr.bf16.mxu0 %v3208_v15 }
  0xe0   :  { %v3106_v24 = vpop.eup %3105  ;;  %v359_v57 = vand.u32 2147483647, %v343_v47  ;;  %v580_v58 = vsub.f32 %v3565_v28, %v579_v25  ;;  %3113 = vrcp.f32 %v305_v55  ;;  %v3624_v33 = vpack.c.bf16 %v579_v25, %v572_v10 }
  0xe1   :  { %v3108_v59 = vpop.eup %3107  ;;  %v3576_v61 = vpop.permute.xlu1 %1198  ;;  %v404_v53 = vsub.f32 %v3104_v51, %v3106_v24  ;;  %v3628_v60 = vsub.f32 %v3581_v63, %v3592_v18 }
  0xe2   :  { %v375_v1 = vadd.f32 1.0, %v359_v57  ;;  %v581_v4 = vand.u32 4294901760, %v580_v58  ;;  %v3110_v35 = vpop.eup %3109  ;;  %v406_v55 = vsub.f32 %v3102_v37, %v3108_v59  ;;  %v3622_v37 = vpack.c.bf16 %v565_v62, %v558_v30  ;;  %v1077_v24 = vpop.permute.xlu0 %1076 }
  0xe3   :  { %v445_v9 = vand.u32 4294901760, %v404_v53  ;;  %v491_v62 = vand.u32 4294901760, %v3628_v60 }
  0xe4   :  { %v3112_v12 = vpop.eup %3111  ;;  %3115 = vrcp.f32 %v375_v1  ;;  %v2763_v16 = vpack.c.bf16 %v581_v4, %v574_v3  ;;  %v451_v57 = vand.u32 4294901760, %v406_v55 }
  0xe5   :  { %v3600_v47 = vpop.permute.xlu1 %1202  ;;  %v405_v49 = vsub.f32 %v3110_v35, %v3112_v12  ;;  %v3602_v51 = vsub.f32 %v404_v53, %v445_v9 }
  0xe6   :  { %2764 = vmatpush3.bf16.msra.mxu1 %v2763_v16  ;;  %v3642_v53 = vsub.f32 %v406_v55, %v451_v57  ;;  %v1082_v4 = vpop.permute.xlu0 %1081  ;;  %v1262_v32 = vsub.f32 %v3600_v47, %v3367_v41  ;;  %v1261_v47 = vsub.f32 %v3576_v61, %v3367_v41  ;;  %v1149_v61 = vsub.f32 %v3561_v21, %v3371_v44 }
  0xe7   :  { %v448_v7 = vand.u32 4294901760, %v405_v49  ;;  %2765 = vmatprep.subr.bf16.mxu1 %v3208_v15  ;;  %v586_v17 = vand.u32 4294901760, %v3602_v51 }
  0xe8   :  { %v600_v20 = vand.u32 4294901760, %v3642_v53 }
  0xe9   :  { %v3630_v34 = vpack.c.bf16 %v448_v7, %v445_v9  ;;  %v3632_v40 = vsub.f32 %v405_v49, %v448_v7  ;;  %v587_v59 = vsub.f32 %v3602_v51, %v586_v17  ;;  %v492_v49 = vsub.f32 %v3628_v60, %v491_v62 }
  0xea   :  { %v3634_v58 = vpop.permute.xlu1 %1086  ;;  %v3114_v10 = vpop.eup %3113 }
  0xeb   :  { %2743 = vmatpush3.bf16.msra.mxu0 %v3630_v34  ;;  %v593_v30 = vand.u32 4294901760, %v3632_v40  ;;  %v588_v9 = vand.u32 4294901760, %v587_v59  ;;  %v493_v31 = vand.u32 4294901760, %v492_v49  ;;  %v3659_v59 = vpop.permute.xlu0 %1096 }
  0xec   :  { %2744 = vmatprep.subr.bf16.mxu0 %v3208_v15 }
  0xed   :  { %v594_v25 = vsub.f32 %v3632_v40, %v593_v30  ;;  %v3644_v1 = vpack.c.bf16 %v593_v30, %v586_v17 }
  0xee   :  { %v3116_v3 = vpop.eup %3115 }
  0xef   :  { %v3646_v35 = vpop.permute.xlu1 %1210  ;;  %v595_v12 = vand.u32 4294901760, %v594_v25  ;;  %v407_v16 = vsub.f32 %v3114_v10, %v3116_v3  ;;  %v601_v10 = vsub.f32 %v3642_v53, %v600_v20 }
  0xf0   :  { %v1264_v0 = vsub.f32 %v3646_v35, %v3367_v41 }
  0xf1   :  { %v2766_v7 = vpack.c.bf16 %v595_v12, %v588_v9  ;;  %v454_v46 = vand.u32 4294901760, %v407_v16  ;;  %v602_v3 = vand.u32 4294901760, %v601_v10  ;;  %v4250_v12 = vmov 0.0  }
  0xf2   :  { %v1280_v21 = vand.u32 2147483647, %v1264_v0 }
  0xf3   :  { %2767 = vmatpush3.bf16.msra.mxu1 %v2766_v7  ;;  %v3652_v55 = vpack.c.bf16 %v454_v46, %v451_v57  ;;  %v3654_v17 = vsub.f32 %v407_v16, %v454_v46  ;;  %v1102_v16 = vpop.permute.xlu0 %1101 }
  0xf4   :  { %v3656_v30 = vpop.permute.xlu1 %1091  ;;  %2768 = vmatprep.subr.bf16.mxu1 %v3208_v15 }
  0xf5   :  { %2746 = vmatpush3.bf16.msra.mxu0 %v3652_v55  ;;  %v4249_v25 = vand.u32 4294901760, %v3654_v17 }
  0xf6   :  { %2771 = vmatprep.subr.bf16.mxu0 %v3208_v15 }
  0xf7   :  { %v608_v46 = vsub.f32 %v3654_v17, %v4249_v25  ;;  %v1150_v25 = vsub.f32 %v1077_v24, %v3371_v44  ;;  %v3690_v10 = vpop.permute.xlu0 %1116  ;;  %v1278_v24 = vand.u32 2147483647, %v1262_v32 }
  0xf8   :  { %2336 = vmatmul.mubr.f32.vlgmr.msra.gmra.mrb[0].mxu0 %v493_v31  ;;  %v4251_v31 = vpack.c.bf16 %v3437_v45, %v3462_v6  ;;  %v4252_v45 = vpack.c.bf16 %v3486_v48, %v3466_v14  ;;  %v2781_v14 = vpack.c.bf16 %v3510_v2, %v3505_v22  ;;  %v1279_v48 = vand.u32 2147483647, %v1263_v39 }
  0xf9   :  { %v3670_v57 = vpop.permute.xlu1 %1214  ;;  %2773 = vmatpush3.bf16.msra.mxu0 %v2772_v13  ;;  %v609_v9 = vand.u32 4294901760, %v608_v46  ;;  %2405 = vmatprep.mubr.msk.f32.mxu0 %vm3209_vm0, %v4250_v12  ;;  %v1151_v13 = vsub.f32 %v1082_v4, %v3371_v44  ;;  %v1166_v6 = vand.u32 2147483647, %v1150_v25  ;;  %v1267_v25 = vsub.f32 %v3567_v36, %v3367_v41 }
  0xfa   :  { %2774 = vmatprep.subr.bf16.mxu0 %v3208_v15  ;;  %v1277_v22 = vand.u32 2147483647, %v1261_v47  ;;  %v2784_v36 = vpack.c.bf16 %v3541_v29, %v3532_v5 }
  0xfb   :  { %v2769_v49 = vpack.c.bf16 %v609_v9, %v602_v3  ;;  %v1167_v4 = vand.u32 2147483647, %v1151_v13  ;;  %v1155_v3 = vsub.f32 %v1102_v16, %v3371_v44  ;;  %v1152_v9 = vsub.f32 %v3634_v58, %v3371_v44  ;;  %v1122_v35 = vpop.permute.xlu0 %1121 }
  0xfc   :  { %v3716_v2 = vadd.f32 %v1278_v24, %v1166_v6  ;;  %v1154_v58 = vsub.f32 %v3659_v59, %v3371_v44  ;;  %v1283_v39 = vand.u32 2147483647, %v1267_v25  ;;  %v1271_v13 = vsub.f32 %v3583_v8, %v3367_v41 }
  0xfd   :  { %v1219_v7 = vpop.permute.xlu1 %1218  ;;  %2770 = vmatpush3.bf16.msra.mxu1 %v2769_v49  ;;  %2776 = vmatpush3.bf16.msra.mxu0 %v4251_v31  ;;  %v1295_v16 = vadd.f32 %v1279_v48, %v1167_v4  ;;  %v1165_v31 = vand.u32 2147483647, %v1149_v61  ;;  %v1168_v6 = vand.u32 2147483647, %v1152_v9  ;;  %v1159_v47 = vsub.f32 %v1122_v35, %v3371_v44 }
  0xfe   :  { %2777 = vmatprep.subr.bf16.mxu0 %v3208_v15  ;;  %2795 = vmatprep.subr.bf16.mxu1 %v3208_v15  ;;  %v1266_v32 = vsub.f32 %v1219_v7, %v3367_v41  ;;  %v1342_v5 = vsub.f32 %v3386_v56, %v3716_v2  ;;  %v1265_v8 = vsub.f32 %v3670_v57, %v3367_v41  ;;  %v1170_v0 = vand.u32 2147483647, %v1154_v58 }
  0xff   :  { %v3729_v24 = vadd.f32 %v1277_v22, %v1165_v31  ;;  %v3735_v29 = vadd.f32 %v1280_v21, %v1168_v6  ;;  %v2787_v59 = vpack.c.bf16 %v3565_v28, %v3546_v52  ;;  %v1343_v7 = vsub.f32 %v3386_v56, %v1295_v16  ;;  %v3750_v9 = vpop.permute.xlu0 %1136 }
 0x100   :  { %2371 = vmatmul.mubr.f32.vlgmr.msra.gmra.mrb[0].mxu1 %v3592_v18  ;;  %v1153_v61 = vsub.f32 %v3656_v30, %v3371_v44  ;;  %v1175_v57 = vand.u32 2147483647, %v1159_v47  ;;  %v1358_v28 = vand.u32 2147483647, %v1342_v5  ;;  %v1281_v22 = vand.u32 2147483647, %v1265_v8 }
 0x101   :  { %2779 = vmatpush3.bf16.msra.mxu0 %v4252_v45  ;;  %2797 = vmatpush3.bf16.msra.mxu1 %v3431_v38  ;;  %v1171_v45 = vand.u32 2147483647, %v1155_v3  ;;  %v1287_v3 = vand.u32 2147483647, %v1271_v13  ;;  %v1341_v52 = vsub.f32 %v3386_v56, %v3729_v24  ;;  %v1344_v30 = vsub.f32 %v3386_v56, %v3735_v29  ;;  %v3780_v8 = vld [vmem:[%s4245_s3] ss:$0 sm:$0xff] }
 0x102   :  { %v3698_v46 = vpop.permute.xlu1 %1106  ;;  %2780 = vmatprep.subr.bf16.mxu0 %v3208_v15  ;;  %2798 = vmatprep.subr.bf16.mxu1 %v3208_v15  ;;  %v2790_v21 = vpack.c.bf16 %v3632_v40, %v3602_v51  ;;  %v1374_v51 = vadd.f32 1.0, %v1358_v28  ;;  %v2793_v47 = vpack.c.bf16 %v3654_v17, %v3642_v53  ;;  %v1310_v5 = vadd.f32 1.0, %v3716_v2  ;;  %s3211_s3 = smov [#allocation2]  }
 0x103   :  { %2440 = vmatprep.mubr.msk.f32.mxu1 %vm3209_vm0, %v4250_v12  ;;  %v3742_v4 = vadd.f32 %v1283_v39, %v1171_v45  ;;  %v1156_v35 = vsub.f32 %v3698_v46, %v3371_v44  ;;  %v1169_v39 = vand.u32 2147483647, %v1153_v61  ;;  %v3767_v46 = vadd.f32 %v1287_v3, %v1175_v57  ;;  %s2074_s6 = sshll.u32 %s3211_s3, 4  ;;  %s2075_s6 = int_to_ptr.vmem [resolvable:$true] %s2074_s6 }
 0x104   :  { %v1357_v6 = vand.u32 2147483647, %v1341_v52  ;;  %s3182_s7 = scalar_lea.vmem %s2075_s6, 32  ;;  %p3187_p1 = scmp.lt.s32.totalorder %s2075_s6, %s2075_s6 }
 0x105   :  { %2782 = vmatpush3.bf16.msra.mxu0 %v2781_v14  ;;  %2800 = vmatpush3.bf16.msra.mxu1 %v3459_v42  ;;  %v1282_v14 = vand.u32 2147483647, %v1266_v32  ;;  %v1347_v31 = vsub.f32 %v3386_v56, %v3742_v4  ;;  %v1158_v32 = vsub.f32 %v3690_v10, %v3371_v44  ;;  %v1360_v56 = vand.u32 2147483647, %v1344_v30  ;;  %p3183_p0 = scmp.ne.s32.totalorder %s2075_s6, %s3182_s7  ;;  %p3188_p2 = scmp.lt.s32.totalorder %s3182_s7, %s3182_s7 }
 0x106   :  { %2783 = vmatprep.subr.bf16.mxu0 %v3208_v15  ;;  %2801 = vmatprep.subr.bf16.mxu1 %v3208_v15  ;;  %v1172_v10 = vand.u32 2147483647, %v1156_v35  ;;  %v1373_v2 = vadd.f32 1.0, %v1357_v6  ;;  %v1309_v30 = vadd.f32 1.0, %v3729_v24  ;;  %v1312_v24 = vadd.f32 1.0, %v3735_v29 }
 0x107   :  { %v1227_v49 = vpop.permute.xlu1 %1226  ;;  %v3760_v58 = vadd.f32 %v1282_v14, %v1170_v0  ;;  %v1363_v61 = vand.u32 2147483647, %v1347_v31  ;;  %v1315_v31 = vadd.f32 1.0, %v3742_v4  ;;  %p3189_p3 = por %p3188_p2, %p3187_p1 }
 0x108   :  { %v1268_v25 = vsub.f32 %v1227_v49, %v3367_v41  ;;  %v1311_v49 = vadd.f32 1.0, %v1295_v16  ;;  %v3772_v16 = vadd.f32 %v1281_v22, %v1169_v39  ;;  %v1376_v22 = vadd.f32 1.0, %v1360_v56 }
 0x109   :  { %2785 = vmatpush3.bf16.msra.mxu0 %v2784_v36  ;;  %2803 = vmatpush3.bf16.msra.mxu1 %v3483_v43  ;;  %v1359_v36 = vand.u32 2147483647, %v1343_v7  ;;  %v3784_v7 = vpop.permute.xlu0 %1141  ;;  %v1379_v4 = vadd.f32 1.0, %v1363_v61  ;;  %p3190_p4 = pnand %p3189_p3, %p3183_p0 }
 0x10a   :  { %2786 = vmatprep.subr.bf16.mxu0 %v3208_v15  ;;  %2804 = vmatprep.subr.bf16.mxu1 %v3208_v15  ;;  %v1284_v13 = vand.u32 2147483647, %v1268_v25  ;;  %3117 = vrcp.f32 %v1311_v49  ;;  %v1174_v25 = vand.u32 2147483647, %v1158_v32  ;;  %v1345_v35 = vsub.f32 %v3780_v8, %v3772_v16 }
 0x10b   :  { %v1375_v14 = vadd.f32 1.0, %v1359_v36  ;;  %3119 = vrcp.f32 %v1374_v51  ;;  %v1163_v29 = vsub.f32 %v3784_v7, %v3371_v44 }
 0x10c   :  { %v1112_v48 = vpop.permute.xlu1 %1111  ;;  %v3787_v3 = vadd.f32 %v1284_v13, %v1172_v10  ;;  %3121 = vrcp.f32 %v1310_v5  ;;  %v1361_v51 = vand.u32 2147483647, %v1345_v35 }
 0x10d   :  { %2788 = vmatpush3.bf16.msra.mxu0 %v2787_v59  ;;  %2806 = vmatpush3.bf16.msra.mxu1 %v3508_v27  ;;  %v1346_v59 = vsub.f32 %v3780_v8, %v3760_v58  ;;  %v1157_v0 = vsub.f32 %v1112_v48, %v3371_v44  ;;  %v1351_v48 = vsub.f32 %v3780_v8, %v3767_v46  ;;  %3123 = vrcp.f32 %v1375_v14  ;;  %v1255_v39 = vpop.permute.xlu0 %1254 }
 0x10e   :  { %2789 = vmatprep.subr.bf16.mxu0 %v3208_v15  ;;  %2807 = vmatprep.subr.bf16.mxu1 %v3208_v15  ;;  %v1348_v32 = vsub.f32 %v3780_v8, %v3787_v3  ;;  %3125 = vrcp.f32 %v1373_v2  ;;  %v1275_v10 = vsub.f32 %v1255_v39, %v3367_v41  ;;  %v1377_v14 = vadd.f32 1.0, %v1361_v51 }
 0x10f   :  { %v1173_v49 = vand.u32 2147483647, %v1157_v0  ;;  %3127 = vrcp.f32 %v1309_v30 }
 0x110   :  { %3129 = vrcp.f32 %v1376_v22  ;;  %v1364_v56 = vand.u32 2147483647, %v1348_v32 }
 0x111   :  { %v1231_v45 = vpop.permute.xlu1 %1230  ;;  %2791 = vmatpush3.bf16.msra.mxu0 %v2790_v21  ;;  %2809 = vmatpush3.bf16.msra.mxu1 %v3539_v26  ;;  %v1362_v21 = vand.u32 2147483647, %v1346_v59  ;;  %3131 = vrcp.f32 %v1315_v31  ;;  %v1314_v59 = vadd.f32 1.0, %v3760_v58  ;;  %v1313_v58 = vadd.f32 1.0, %v3772_v16 }
 0x112   :  { %v1269_v40 = vsub.f32 %v1231_v45, %v3367_v41  ;;  %2792 = vmatprep.subr.bf16.mxu0 %v3208_v15  ;;  %2810 = vmatprep.subr.bf16.mxu1 %v3208_v15  ;;  %3133 = vrcp.f32 %v1312_v24 }
 0x113   :  { %3135 = vrcp.f32 %v1379_v4 }
 0x114   :  { %v1285_v52 = vand.u32 2147483647, %v1269_v40  ;;  %v1378_v40 = vadd.f32 1.0, %v1362_v21  ;;  %v3118_v5 = vpop.eup %3117 }
 0x115   :  { %v1235_v57 = vpop.permute.xlu1 %1234  ;;  %2794 = vmatpush3.bf16.msra.mxu0 %v2793_v47  ;;  %2812 = vmatpush3.bf16.msra.mxu1 %v3563_v23 }
 0x116   :  { %v1270_v28 = vsub.f32 %v1235_v57, %v3367_v41  ;;  %2813 = vmatprep.subr.bf16.mxu1 %v3208_v15  ;;  %2819 = vmatprep.subr.bf16.mxu0 %v3208_v15  ;;  %v3805_v13 = vadd.f32 %v1285_v52, %v1173_v49  ;;  %3137 = vrcp.f32 %v1378_v40  ;;  %v1380_v52 = vadd.f32 1.0, %v1364_v56 }
 0x117   :  { %3139 = vrcp.f32 %v1314_v59  ;;  %v1162_v40 = vsub.f32 %v3750_v9, %v3371_v44 }
 0x118   :  { %v1286_v36 = vand.u32 2147483647, %v1270_v28  ;;  %2406 = vmatmul.mubr.f32.vlgmr.msra.gmra.mrb[2].mxu0 %v3628_v60  ;;  %v1349_v0 = vsub.f32 %v3780_v8, %v3805_v13  ;;  %v1291_v28 = vand.u32 2147483647, %v1275_v10  ;;  %3141 = vrcp.f32 %v1377_v14 }
 0x119   :  { %2815 = vmatpush3.bf16.msra.mxu1 %v3630_v34  ;;  %2821 = vmatpush3.bf16.msra.mxu0 %v3589_v11  ;;  %v1367_v11 = vand.u32 2147483647, %v1351_v48 }
 0x11a   :  { %v3807_v45 = vadd.f32 %v1286_v36, %v1174_v25  ;;  %v1127_v6 = vpop.permute.xlu1 %1126  ;;  %2816 = vmatprep.subr.bf16.mxu1 %v3208_v15  ;;  %2822 = vmatprep.subr.bf16.mxu0 %v3208_v15  ;;  %v3120_v25 = vpop.eup %3119  ;;  %v1365_v22 = vand.u32 2147483647, %v1349_v0 }
 0x11b   :  { %2475 = vmatprep.mubr.msk.f32.mxu0 %vm3209_vm0, %v4250_v12  ;;  %v1160_v7 = vsub.f32 %v1127_v6, %v3371_v44  ;;  %v1383_v57 = vadd.f32 1.0, %v1367_v11  ;;  %v3122_v30 = vpop.eup %3121 }
 0x11c   :  { %v1350_v47 = vsub.f32 %v3780_v8, %v3807_v45  ;;  %v3124_v60 = vpop.eup %3123  ;;  %v3835_v16 = vsub.f32 %v3122_v30, %v3120_v25  ;;  %v1381_v39 = vadd.f32 1.0, %v1365_v22  ;;  %v1318_v51 = vadd.f32 1.0, %v3807_v45 }
 0x11d   :  { %2818 = vmatpush3.bf16.msra.mxu1 %v3652_v55  ;;  %2824 = vmatpush3.bf16.msra.mxu0 %v3598_v19  ;;  %v1179_v19 = vand.u32 2147483647, %v1163_v29  ;;  %v1176_v35 = vand.u32 2147483647, %v1160_v7  ;;  %3143 = vrcp.f32 %v1383_v57 }
 0x11e   :  { %2825 = vmatprep.subr.bf16.mxu0 %v3208_v15  ;;  %2843 = vmatprep.subr.bf16.mxu1 %v3208_v15  ;;  %v1366_v48 = vand.u32 2147483647, %v1350_v47  ;;  %3145 = vrcp.f32 %v1313_v58 }
 0x11f   :  { %v1243_v61 = vpop.permute.xlu1 %1242  ;;  %v1307_v32 = vadd.f32 %v1291_v28, %v1179_v19  ;;  %3147 = vrcp.f32 %v1380_v52 }
 0x120   :  { %v1272_v2 = vsub.f32 %v1243_v61, %v3367_v41  ;;  %2441 = vmatmul.mubr.f32.vlgmr.msra.gmra.mrb[2].mxu1 %v491_v62  ;;  %v1319_v62 = vadd.f32 1.0, %v3767_v46  ;;  %v1382_v24 = vadd.f32 1.0, %v1366_v48 }
 0x121   :  { %2827 = vmatpush3.bf16.msra.mxu0 %v3608_v50  ;;  %2845 = vmatpush3.bf16.msra.mxu1 %v3431_v38  ;;  %v3126_v50 = vpop.eup %3125  ;;  %v1316_v38 = vadd.f32 1.0, %v3787_v3  ;;  %v3845_v3 = vsub.f32 %v3118_v5, %v3124_v60  ;;  %v1355_v47 = vsub.f32 %v3780_v8, %v1307_v32  ;;  %v1317_v5 = vadd.f32 1.0, %v3805_v13 }
 0x122   :  { %v1288_v21 = vand.u32 2147483647, %v1272_v2  ;;  %2828 = vmatprep.subr.bf16.mxu0 %v3208_v15  ;;  %2846 = vmatprep.subr.bf16.mxu1 %v3208_v15  ;;  %v3128_v31 = vpop.eup %3127  ;;  %3149 = vrcp.f32 %v1319_v62  ;;  %v1323_v13 = vadd.f32 1.0, %v1307_v32 }
 0x123   :  { %2510 = vmatprep.mubr.msk.f32.mxu1 %vm3209_vm0, %v4250_v12  ;;  %v3130_v46 = vpop.eup %3129  ;;  %v3848_v11 = vsub.f32 %v3128_v31, %v3126_v50  ;;  %3151 = vrcp.f32 %v1316_v38  ;;  %v1431_v14 = vand.u32 4294901760, %v3845_v3  ;;  %v1371_v52 = vand.u32 2147483647, %v1355_v47 }
 0x124   :  { %v1304_v49 = vadd.f32 %v1288_v21, %v1176_v35  ;;  %v1132_v36 = vpop.permute.xlu1 %1131  ;;  %v3132_v4 = vpop.eup %3131  ;;  %3153 = vrcp.f32 %v1382_v24 }
 0x125   :  { %2830 = vmatpush3.bf16.msra.mxu0 %v3614_v54  ;;  %2848 = vmatpush3.bf16.msra.mxu1 %v3459_v42  ;;  %v1428_v54 = vand.u32 4294901760, %v3835_v16  ;;  %v3134_v42 = vpop.eup %3133  ;;  %v1161_v56 = vsub.f32 %v1132_v36, %v3371_v44  ;;  %3155 = vrcp.f32 %v1381_v39  ;;  %v1425_v61 = vand.u32 4294901760, %v3848_v11 }
 0x126   :  { %v1352_v6 = vsub.f32 %v3780_v8, %v1304_v49  ;;  %2831 = vmatprep.subr.bf16.mxu0 %v3208_v15  ;;  %2849 = vmatprep.subr.bf16.mxu1 %v3208_v15  ;;  %v3136_v10 = vpop.eup %3135  ;;  %v3858_v45 = vsub.f32 %v3134_v42, %v3130_v46  ;;  %3157 = vrcp.f32 %v1318_v51  ;;  %v1320_v25 = vadd.f32 1.0, %v1304_v49 }
 0x127   :  { %v3138_v0 = vpop.eup %3137  ;;  %v1177_v57 = vand.u32 2147483647, %v1161_v56  ;;  %v3870_v2 = vsub.f32 %v3132_v4, %v3136_v10  ;;  %3159 = vrcp.f32 %v1317_v5  ;;  %v3883_v60 = vsub.f32 %v3845_v3, %v1431_v14 }
 0x128   :  { %v1368_v29 = vand.u32 2147483647, %v1352_v6  ;;  %v1434_v48 = vand.u32 4294901760, %v3858_v45  ;;  %v3888_v62 = vsub.f32 %v3848_v11, %v1425_v61  ;;  %v1387_v24 = vadd.f32 1.0, %v1371_v52 }
 0x129   :  { %v1247_v59 = vpop.permute.xlu1 %1246  ;;  %2833 = vmatpush3.bf16.msra.mxu0 %v3622_v37  ;;  %2851 = vmatpush3.bf16.msra.mxu1 %v3483_v43  ;;  %v3868_v43 = vsub.f32 %v3835_v16, %v1428_v54  ;;  %v3140_v37 = vpop.eup %3139  ;;  %v4253_v56 = vand.u32 4294901760, %v3654_v17 }
 0x12a   :  { %v1384_v9 = vadd.f32 1.0, %v1368_v29  ;;  %v1273_v7 = vsub.f32 %v1247_v59, %v3367_v41  ;;  %2834 = vmatprep.subr.bf16.mxu0 %v3208_v15  ;;  %2852 = vmatprep.subr.bf16.mxu1 %v3208_v15  ;;  %v3142_v58 = vpop.eup %3141  ;;  %v3875_v30 = vsub.f32 %v3140_v37, %v3138_v0  ;;  %v3899_v39 = vsub.f32 %v3858_v45, %v1434_v48 }
 0x12b   :  { %v3144_v22 = vpop.eup %3143  ;;  %v1525_v50 = vand.u32 4294901760, %v3868_v43  ;;  %v1443_v29 = vand.u32 4294901760, %v3870_v2  ;;  %v2841_v10 = vpack.c.bf16 %v4253_v56, %v600_v20  ;;  %v1518_v47 = vand.u32 4294901760, %v3888_v62 }
 0x12c   :  { %v1289_v19 = vand.u32 2147483647, %v1273_v7  ;;  %3161 = vrcp.f32 %v1384_v9  ;;  %v1440_v6 = vand.u32 4294901760, %v3875_v30 }
 0x12d   :  { %v1251_v28 = vpop.permute.xlu1 %1250  ;;  %2836 = vmatpush3.bf16.msra.mxu0 %v3624_v33  ;;  %2854 = vmatpush3.bf16.msra.mxu1 %v3508_v27  ;;  %v3146_v33 = vpop.eup %3145  ;;  %v1178_v27 = vand.u32 2147483647, %v1162_v40  ;;  %3163 = vrcp.f32 %v1323_v13  ;;  %v1526_v37 = vsub.f32 %v3868_v43, %v1525_v50 }
 0x12e   :  { %v1305_v35 = vadd.f32 %v1289_v19, %v1177_v57  ;;  %v1274_v21 = vsub.f32 %v1251_v28, %v3367_v41  ;;  %2837 = vmatprep.subr.bf16.mxu0 %v3208_v15  ;;  %2855 = vmatprep.subr.bf16.mxu1 %v3208_v15  ;;  %v3148_v38 = vpop.eup %3147  ;;  %3165 = vrcp.f32 %v1320_v25  ;;  %v3892_v31 = vsub.f32 %v3146_v33, %v3142_v58 }
 0x12f   :  { %v3150_v32 = vpop.eup %3149  ;;  %v3924_v20 = vsub.f32 %v3875_v30, %v1440_v6  ;;  %v1539_v25 = vand.u32 4294901760, %v3899_v39  ;;  %v3936_v28 = vpack.c.bf16 %v1428_v54, %v1425_v61  ;;  %v1527_v61 = vand.u32 4294901760, %v1526_v37 }
 0x130   :  { %v1353_v49 = vsub.f32 %v3780_v8, %v1305_v35  ;;  %v1290_v36 = vand.u32 2147483647, %v1274_v21  ;;  %v1321_v46 = vadd.f32 1.0, %v1305_v35  ;;  %v3152_v4 = vpop.eup %3151  ;;  %v3913_v59 = vsub.f32 %v3150_v32, %v3144_v22 }
 0x131   :  { %2839 = vmatpush3.bf16.msra.mxu0 %v3644_v1  ;;  %2857 = vmatpush3.bf16.msra.mxu1 %v3539_v26  ;;  %v1532_v1 = vand.u32 4294901760, %v3883_v60  ;;  %v3154_v26 = vpop.eup %3153  ;;  %v3911_v5 = vsub.f32 %v3152_v4, %v3148_v38  ;;  %v1437_v13 = vand.u32 4294901760, %v3892_v31  ;;  %v1519_v22 = vsub.f32 %v3888_v62, %v1518_v47 }
 0x132   :  { %v1369_v51 = vand.u32 2147483647, %v1353_v49  ;;  %v1306_v42 = vadd.f32 %v1290_v36, %v1178_v27  ;;  %v1147_v40 = vpop.permute.xlu1 %1146  ;;  %2840 = vmatprep.subr.bf16.mxu0 %v3208_v15  ;;  %2858 = vmatprep.subr.bf16.mxu1 %v3208_v15  ;;  %v3156_v0 = vpop.eup %3155  ;;  %3167 = vrcp.f32 %v1321_v46  ;;  %v1553_v27 = vand.u32 4294901760, %v3924_v20 }
 0x133   :  { %v3158_v53 = vpop.eup %3157  ;;  %v1164_v19 = vsub.f32 %v1147_v40, %v3371_v44  ;;  %v1446_v44 = vand.u32 4294901760, %v3911_v5  ;;  %v3947_v11 = vsub.f32 %v3892_v31, %v1437_v13  ;;  %v1533_v3 = vsub.f32 %v3883_v60, %v1532_v1 }
 0x134   :  { %v1385_v9 = vadd.f32 1.0, %v1369_v51  ;;  %v1354_v7 = vsub.f32 %v3780_v8, %v1306_v42  ;;  %v1322_v17 = vadd.f32 1.0, %v1306_v42  ;;  %v3930_v58 = vsub.f32 %v3158_v53, %v3154_v26  ;;  %v3160_v52 = vpop.eup %3159 }
 0x135   :  { %2842 = vmatpush3.bf16.msra.mxu0 %v2841_v10  ;;  %2860 = vmatpush3.bf16.msra.mxu1 %v3563_v23  ;;  %v3949_v16 = vsub.f32 %v3160_v52, %v3156_v0  ;;  %v1180_v49 = vand.u32 2147483647, %v1164_v19  ;;  %v3971_v46 = vsub.f32 %v3911_v5, %v1446_v44  ;;  %v3988_v40 = vsub.f32 %v3870_v2, %v1443_v29 }
 0x136   :  { %3169 = vrcp.f32 %v1385_v9  ;;  %v1370_v57 = vand.u32 2147483647, %v1354_v7  ;;  %2861 = vmatprep.subr.bf16.mxu1 %v3208_v15  ;;  %2867 = vmatprep.subr.bf16.mxu0 %v3208_v15  ;;  %v3162_v35 = vpop.eup %3161  ;;  %v1452_v32 = vand.u32 4294901760, %v3930_v58  ;;  %v1455_v26 = vand.u32 4294901760, %v3913_v59 }
 0x137   :  { %3171 = vrcp.f32 %v1387_v24  ;;  %v1259_v23 = vpop.permute.xlu1 %1258  ;;  %v3951_v54 = vpop.eup %3163  ;;  %v1520_v24 = vand.u32 4294901760, %v1519_v22  ;;  %v1449_v45 = vand.u32 4294901760, %v3949_v16  ;;  %v1567_v37 = vand.u32 4294901760, %v3971_v46 }
 0x138   :  { %v1386_v21 = vadd.f32 1.0, %v1370_v57  ;;  %v1276_v33 = vsub.f32 %v1259_v23, %v3367_v41  ;;  %2476 = vmatmul.mubr.f32.vlgmr.msra.gmra.mrb[4].mxu0 %v3592_v18  ;;  %3173 = vrcp.f32 %v1322_v17  ;;  %v1540_v41 = vsub.f32 %v3899_v39, %v1539_v25  ;;  %v3166_v38 = vpop.eup %3165 }
 0x139   :  { %2863 = vmatpush3.bf16.msra.mxu1 %v3630_v34  ;;  %2869 = vmatpush3.bf16.msra.mxu0 %v3936_v28  ;;  %v3966_v34 = vpack.c.bf16 %v1434_v48, %v1431_v14  ;;  %v3973_v4 = vsub.f32 %v3166_v38, %v3162_v35  ;;  %v1546_v14 = vand.u32 4294901760, %v3947_v11  ;;  %v1422_v48 = vrot.slane %v3581_v63, 1 }
 0x13a   :  { %3175 = vrcp.f32 %v1386_v21  ;;  %v1292_v36 = vand.u32 2147483647, %v1276_v33  ;;  %2864 = vmatprep.subr.bf16.mxu1 %v3208_v15  ;;  %2870 = vmatprep.subr.bf16.mxu0 %v3208_v15  ;;  %v2892_v42 = vpack.c.bf16 %v1527_v61, %v1520_v24  ;;  %v1541_v10 = vand.u32 4294901760, %v1540_v41 }
 0x13b   :  { %2545 = vmatprep.mubr.msk.f32.mxu0 %vm3209_vm0, %v4250_v12  ;;  %v3997_v63 = vsub.f32 %v3930_v58, %v1452_v32  ;;  %v1458_v7 = vand.u32 4294901760, %v3973_v4  ;;  %v1534_v57 = vand.u32 4294901760, %v1533_v3  ;;  %v4012_v19 = vsub.f32 %v3949_v16, %v1449_v45 }
 0x13c   :  { %v1308_v51 = vadd.f32 %v1292_v36, %v1180_v49  ;;  %v3168_v0 = vpop.eup %3167  ;;  %v1547_v31 = vsub.f32 %v3947_v11, %v1546_v14  ;;  %v4017_v30 = vand.u32 4294901760, %v1422_v48  ;;  %v4028_v33 = vpack.c.bf16 %v1446_v44, %v1443_v29 }
 0x13d   :  { %2866 = vmatpush3.bf16.msra.mxu1 %v3652_v55  ;;  %2872 = vmatpush3.bf16.msra.mxu0 %v3966_v34  ;;  %v1554_v55 = vsub.f32 %v3924_v20, %v1553_v27  ;;  %v1581_v35 = vand.u32 4294901760, %v3997_v63  ;;  %v4031_v16 = vsub.f32 %v3973_v4, %v1458_v7  ;;  %v1568_v61 = vsub.f32 %v3971_v46, %v1567_v37 }
 0x13e   :  { %v1356_v56 = vsub.f32 %v3780_v8, %v1308_v51  ;;  %2873 = vmatprep.subr.bf16.mxu0 %v3208_v15  ;;  %2891 = vmatprep.subr.bf16.mxu1 %v3208_v15  ;;  %v1324_v9 = vadd.f32 1.0, %v1308_v51  ;;  %v4006_v8 = vpack.c.bf16 %v1440_v6, %v1437_v13  ;;  %v1560_v6 = vand.u32 4294901760, %v3988_v40 }
 0x13f   :  { %v1555_v22 = vand.u32 4294901760, %v1554_v55  ;;  %v1548_v38 = vand.u32 4294901760, %v1547_v31  ;;  %v4041_v2 = vsub.f32 %v3913_v59, %v1455_v26  ;;  %v1574_v29 = vand.u32 4294901760, %v4012_v19 }
 0x140   :  { %v3170_v53 = vpop.eup %3169  ;;  %v1372_v17 = vand.u32 2147483647, %v1356_v56  ;;  %2511 = vmatmul.mubr.f32.vlgmr.msra.gmra.mrb[4].mxu1 %v3592_v18  ;;  %v2895_v18 = vpack.c.bf16 %v1541_v10, %v1534_v57  ;;  %3177 = vrcp.f32 %v1324_v9  ;;  %v1561_v5 = vsub.f32 %v3988_v40, %v1560_v6 }
 0x141   :  { %v3172_v52 = vpop.eup %3171  ;;  %2875 = vmatpush3.bf16.msra.mxu0 %v4006_v8  ;;  %2893 = vmatpush3.bf16.msra.mxu1 %v2892_v42  ;;  %v1417_v13 = vsub.f32 %v3168_v0, %v3170_v53  ;;  %v2898_v24 = vpack.c.bf16 %v1555_v22, %v1548_v38  ;;  %v1582_v4 = vsub.f32 %v3997_v63, %v1581_v35  ;;  %v1569_v3 = vand.u32 4294901760, %v1568_v61 }
 0x142   :  { %v1388_v23 = vadd.f32 1.0, %v1372_v17  ;;  %2876 = vmatprep.subr.bf16.mxu0 %v3208_v15  ;;  %2894 = vmatprep.subr.bf16.mxu1 %v3208_v15  ;;  %v3174_v21 = vpop.eup %3173  ;;  %v1419_v36 = vsub.f32 %v3951_v54, %v3172_v52  ;;  %v4056_v51 = vpack.c.bf16 %v1452_v32, %v1449_v45  ;;  %v1595_v56 = vand.u32 4294901760, %v4031_v16 }
 0x143   :  { %2580 = vmatprep.mubr.msk.f32.mxu1 %vm3209_vm0, %v4250_v12  ;;  %v1461_v49 = vand.u32 4294901760, %v1417_v13  ;;  %v1575_v54 = vsub.f32 %v4012_v19, %v1574_v29  ;;  %v1588_v10 = vand.u32 4294901760, %v4041_v2  ;;  %v4064_v55 = vsub.f32 %v1422_v48, %v4017_v30 }
 0x144   :  { %v3176_v41 = vpop.eup %3175  ;;  %3179 = vrcp.f32 %v1388_v23  ;;  %v1562_v0 = vand.u32 4294901760, %v1561_v5  ;;  %v1467_v45 = vand.u32 4294901760, %v1419_v36  ;;  %v1583_v9 = vand.u32 4294901760, %v1582_v4 }
 0x145   :  { %2878 = vmatpush3.bf16.msra.mxu0 %v4028_v33  ;;  %2896 = vmatpush3.bf16.msra.mxu1 %v2895_v18  ;;  %v1418_v44 = vsub.f32 %v3174_v21, %v3176_v41  ;;  %v4067_v58 = vsub.f32 %v1417_v13, %v1461_v49  ;;  %v4075_v53 = vpack.c.bf16 %v1458_v7, %v1455_v26  ;;  %v1576_v31 = vand.u32 4294901760, %v1575_v54 }
 0x146   :  { %2879 = vmatprep.subr.bf16.mxu0 %v3208_v15  ;;  %2897 = vmatprep.subr.bf16.mxu1 %v3208_v15  ;;  %v2901_v48 = vpack.c.bf16 %v1569_v3, %v1562_v0  ;;  %v1596_v17 = vsub.f32 %v4031_v16, %v1595_v56  ;;  %v1507_v52 = vand.u32 4294901760, %v4064_v55  ;;  %v4083_v23 = vsub.f32 %v1419_v36, %v1467_v45 }
 0x147   :  { %v1464_v42 = vand.u32 4294901760, %v1418_v44  ;;  %v1589_v59 = vsub.f32 %v4041_v2, %v1588_v10  ;;  %v1602_v26 = vand.u32 4294901760, %v4067_v58  ;;  %v2904_v18 = vpack.c.bf16 %v1583_v9, %v1576_v31 }
 0x148   :  { %v1597_v61 = vand.u32 4294901760, %v1596_v17  ;;  %v1508_v38 = vsub.f32 %v4064_v55, %v1507_v52  ;;  %v1616_v36 = vand.u32 4294901760, %v4083_v23  ;;  %v2916_v17 = vpack.c.bf16 %v3868_v43, %v3888_v62 }
 0x149   :  { %2881 = vmatpush3.bf16.msra.mxu0 %v4056_v51  ;;  %2899 = vmatpush3.bf16.msra.mxu1 %v2898_v24  ;;  %v4069_v32 = vsub.f32 %v1418_v44, %v1464_v42  ;;  %v4091_v22 = vpack.c.bf16 %v1464_v42, %v1461_v49  ;;  %v1590_v44 = vand.u32 4294901760, %v1589_v59  ;;  %v1603_v49 = vsub.f32 %v4067_v58, %v1602_v26 }
 0x14a   :  { %2882 = vmatprep.subr.bf16.mxu0 %v3208_v15  ;;  %2900 = vmatprep.subr.bf16.mxu1 %v3208_v15  ;;  %v3178_v13 = vpop.eup %3177  ;;  %v1509_v54 = vand.u32 4294901760, %v1508_v38  ;;  %v1617_v9 = vsub.f32 %v4083_v23, %v1616_v36  ;;  %v2931_v38 = vpack.c.bf16 %v4031_v16, %v4041_v2  ;;  %v2970_v43 = vpack.c.bf16 %v1553_v27, %v1546_v14 }
 0x14b   :  { %v1609_v57 = vand.u32 4294901760, %v4069_v32  ;;  %v2907_v3 = vpack.c.bf16 %v1597_v61, %v1590_v44  ;;  %v1604_v0 = vand.u32 4294901760, %v1603_v49  ;;  %v2925_v61 = vpack.c.bf16 %v3971_v46, %v3988_v40 }
 0x14c   :  { %v2964_v49 = vpack.c.bf16 %v1525_v50, %v1518_v47  ;;  %v2976_v62 = vpack.c.bf16 %v1581_v35, %v1574_v29 }
 0x14d   :  { %2884 = vmatpush3.bf16.msra.mxu0 %v4075_v53  ;;  %2902 = vmatpush3.bf16.msra.mxu1 %v2901_v48  ;;  %v1610_v41 = vsub.f32 %v4069_v32, %v1609_v57  ;;  %v2982_v50 = vpack.c.bf16 %v1609_v57, %v1602_v26 }
 0x14e   :  { %v3180_v7 = vpop.eup %3179  ;;  %2885 = vmatprep.subr.bf16.mxu0 %v3208_v15  ;;  %2903 = vmatprep.subr.bf16.mxu1 %v3208_v15 }
 0x14f   :  { %v1420_v21 = vsub.f32 %v3178_v13, %v3180_v7  ;;  %v1611_v42 = vand.u32 4294901760, %v1610_v41  ;;  %v1618_v13 = vand.u32 4294901760, %v1617_v9  ;;  %v2928_v41 = vpack.c.bf16 %v3997_v63, %v4012_v19 }
 0x151   :  { %2887 = vmatpush3.bf16.msra.mxu0 %v4091_v22  ;;  %2905 = vmatpush3.bf16.msra.mxu1 %v2904_v18  ;;  %v1470_v5 = vand.u32 4294901760, %v1420_v21  ;;  %v2919_v18 = vpack.c.bf16 %v3899_v39, %v3883_v60  ;;  %v2973_v60 = vpack.c.bf16 %v1567_v37, %v1560_v6 }
 0x152   :  { %2888 = vmatprep.subr.bf16.mxu0 %v3208_v15  ;;  %2906 = vmatprep.subr.bf16.mxu1 %v3208_v15 }
 0x153   :  { %v4106_v24 = vpack.c.bf16 %v1470_v5, %v1467_v45  ;;  %v4108_v4 = vsub.f32 %v1420_v21, %v1470_v5  ;;  %v2910_v45 = vpack.c.bf16 %v1611_v42, %v1604_v0  ;;  %v2922_v21 = vpack.c.bf16 %v3924_v20, %v3947_v11 }
 0x154   :  { %v2934_v5 = vpack.c.bf16 %v4069_v32, %v4067_v58 }
 0x155   :  { %2890 = vmatpush3.bf16.msra.mxu0 %v4106_v24  ;;  %2908 = vmatpush3.bf16.msra.mxu1 %v2907_v3  ;;  %v1623_v48 = vand.u32 4294901760, %v4108_v4  ;;  %v2937_v44 = vpack.c.bf16 %v4108_v4, %v4083_v23  ;;  %v2967_v3 = vpack.c.bf16 %v1539_v25, %v1532_v1 }
 0x156   :  { %2909 = vmatprep.subr.bf16.mxu1 %v3208_v15  ;;  %2915 = vmatprep.subr.bf16.mxu0 %v3208_v15 }
 0x157   :  { %v1624_v31 = vsub.f32 %v4108_v4, %v1623_v48  ;;  %v2985_v39 = vpack.c.bf16 %v1623_v48, %v1616_v36 }
 0x158   :  { %2546 = vmatmul.mubr.f32.vlgmr.msra.gmra.mrb[6].mxu0 %v1509_v54 }
 0x159   :  { %2911 = vmatpush3.bf16.msra.mxu1 %v2910_v45  ;;  %2917 = vmatpush3.bf16.msra.mxu0 %v2916_v17  ;;  %v1625_v59 = vand.u32 4294901760, %v1624_v31 }
 0x15a   :  { %2912 = vmatprep.subr.bf16.mxu1 %v3208_v15  ;;  %2918 = vmatprep.subr.bf16.mxu0 %v3208_v15 }
 0x15b   :  { %v2913_v7 = vpack.c.bf16 %v1625_v59, %v1618_v13  ;;  %2615 = vmatprep.mubr.msk.f32.mxu0 %vm3209_vm0, %v4250_v12 }
 0x15d   :  { %2914 = vmatpush3.bf16.msra.mxu1 %v2913_v7  ;;  %2920 = vmatpush3.bf16.msra.mxu0 %v2919_v18 }
 0x15e   :  { %2921 = vmatprep.subr.bf16.mxu0 %v3208_v15  ;;  %2939 = vmatprep.subr.bf16.mxu1 %v3208_v15 }
 0x160   :  { %2581 = vmatmul.mubr.f32.vlgmr.msra.gmra.mrb[6].mxu1 %v4017_v30 }
 0x161   :  { %2923 = vmatpush3.bf16.msra.mxu0 %v2922_v21  ;;  %2941 = vmatpush3.bf16.msra.mxu1 %v3936_v28 }
 0x162   :  { %2924 = vmatprep.subr.bf16.mxu0 %v3208_v15  ;;  %2942 = vmatprep.subr.bf16.mxu1 %v3208_v15 }
 0x163   :  { %2650 = vmatprep.mubr.msk.f32.mxu1 %vm3209_vm0, %v4250_v12 }
 0x165   :  { %2926 = vmatpush3.bf16.msra.mxu0 %v2925_v61  ;;  %2944 = vmatpush3.bf16.msra.mxu1 %v3966_v34 }
 0x166   :  { %2927 = vmatprep.subr.bf16.mxu0 %v3208_v15  ;;  %2945 = vmatprep.subr.bf16.mxu1 %v3208_v15 }
 0x169   :  { %2929 = vmatpush3.bf16.msra.mxu0 %v2928_v41  ;;  %2947 = vmatpush3.bf16.msra.mxu1 %v4006_v8 }
 0x16a   :  { %2930 = vmatprep.subr.bf16.mxu0 %v3208_v15  ;;  %2948 = vmatprep.subr.bf16.mxu1 %v3208_v15 }
 0x16d   :  { %2932 = vmatpush3.bf16.msra.mxu0 %v2931_v38  ;;  %2950 = vmatpush3.bf16.msra.mxu1 %v4028_v33 }
 0x16e   :  { %2933 = vmatprep.subr.bf16.mxu0 %v3208_v15  ;;  %2951 = vmatprep.subr.bf16.mxu1 %v3208_v15 }
 0x171   :  { %2935 = vmatpush3.bf16.msra.mxu0 %v2934_v5  ;;  %2953 = vmatpush3.bf16.msra.mxu1 %v4056_v51 }
 0x172   :  { %2936 = vmatprep.subr.bf16.mxu0 %v3208_v15  ;;  %2954 = vmatprep.subr.bf16.mxu1 %v3208_v15 }
 0x175   :  { %2938 = vmatpush3.bf16.msra.mxu0 %v2937_v44  ;;  %2956 = vmatpush3.bf16.msra.mxu1 %v4075_v53 }
 0x176   :  { %2957 = vmatprep.subr.bf16.mxu1 %v3208_v15  ;;  %2963 = vmatprep.subr.bf16.mxu0 %v3208_v15 }
 0x178   :  { %2616 = vmatmul.mubr.f32.vlgmr.msra.gmra.mrb[8].mxu0 %v4064_v55 }
 0x179   :  { %2959 = vmatpush3.bf16.msra.mxu1 %v4091_v22  ;;  %2965 = vmatpush3.bf16.msra.mxu0 %v2964_v49 }
 0x17a   :  { %2960 = vmatprep.subr.bf16.mxu1 %v3208_v15  ;;  %2966 = vmatprep.subr.bf16.mxu0 %v3208_v15 }
 0x17b   :  { %2685 = vmatprep.mubr.msk.f32.mxu0 %vm3209_vm0, %v4250_v12 }
 0x17d   :  { %2962 = vmatpush3.bf16.msra.mxu1 %v4106_v24  ;;  %2968 = vmatpush3.bf16.msra.mxu0 %v2967_v3 }
 0x17e   :  { %2969 = vmatprep.subr.bf16.mxu0 %v3208_v15  ;;  %2987 = vmatprep.subr.bf16.mxu1 %v3208_v15 }
 0x180   :  { %2651 = vmatmul.mubr.f32.vlgmr.msra.gmra.mrb[8].mxu1 %v1507_v52 }
 0x181   :  { %2971 = vmatpush3.bf16.msra.mxu0 %v2970_v43  ;;  %2989 = vmatpush3.bf16.msra.mxu1 %v3936_v28 }
 0x182   :  { %2972 = vmatprep.subr.bf16.mxu0 %v3208_v15  ;;  %2990 = vmatprep.subr.bf16.mxu1 %v3208_v15 }
 0x183   :  { %2720 = vmatprep.mubr.msk.f32.mxu1 %vm3209_vm0, %v4250_v12  ;;  %v2979_v12 = vpack.c.bf16 %v1595_v56, %v1588_v10 }
 0x185   :  { %2974 = vmatpush3.bf16.msra.mxu0 %v2973_v60  ;;  %2992 = vmatpush3.bf16.msra.mxu1 %v3966_v34 }
 0x186   :  { %2975 = vmatprep.subr.bf16.mxu0 %v3208_v15  ;;  %2993 = vmatprep.subr.bf16.mxu1 %v3208_v15 }
 0x189   :  { %2977 = vmatpush3.bf16.msra.mxu0 %v2976_v62  ;;  %2995 = vmatpush3.bf16.msra.mxu1 %v4006_v8 }
 0x18a   :  { %2978 = vmatprep.subr.bf16.mxu0 %v3208_v15  ;;  %2996 = vmatprep.subr.bf16.mxu1 %v3208_v15 }
 0x18d   :  { %2980 = vmatpush3.bf16.msra.mxu0 %v2979_v12  ;;  %2998 = vmatpush3.bf16.msra.mxu1 %v4028_v33 }
 0x18e   :  { %2981 = vmatprep.subr.bf16.mxu0 %v3208_v15  ;;  %2999 = vmatprep.subr.bf16.mxu1 %v3208_v15 }
 0x191   :  { %2983 = vmatpush3.bf16.msra.mxu0 %v2982_v50  ;;  %3001 = vmatpush3.bf16.msra.mxu1 %v4056_v51 }
 0x192   :  { %2984 = vmatprep.subr.bf16.mxu0 %v3208_v15  ;;  %3002 = vmatprep.subr.bf16.mxu1 %v3208_v15 }
 0x195   :  { %2986 = vmatpush3.bf16.msra.mxu0 %v2985_v39  ;;  %3004 = vmatpush3.bf16.msra.mxu1 %v4075_v53 }
 0x196   :  { %3005 = vmatprep.subr.bf16.mxu1 %v3208_v15 }
 0x198   :  { %2686 = vmatmul.mubr.f32.vlgmr.msra.gmra.mrb[10].mxu0 %v4017_v30 }
 0x199   :  { %3007 = vmatpush3.bf16.msra.mxu1 %v4091_v22  ;;  %v2065_v22 = vld [vmem:[#allocation2 + $0x1] sm:$0x1] }
 0x19a   :  { %3008 = vmatprep.subr.bf16.mxu1 %v3208_v15  ;;  %v1049_v15 = vld [vmem:[#allocation2] sm:$0x1] }
 0x19d   :  { %3010 = vmatpush3.bf16.msra.mxu1 %v4106_v24 }
 0x1a0   :  { %2721 = vmatmul.mubr.f32.vlgmr.msra.gmra.mrb[10].mxu1 %v4017_v30 }
 0x1cb   :  { %v495_v1 = vpop.f32.mrb[0].mxu0 }
 0x1cc   :  { %v2337_v47 = vpop.f32.mrb[1].mxu0 }
 0x1d3   :  { %v646_v20 = vpop.f32.mrb[0].mxu1 }
 0x1d4   :  { %v647_v25 = vadd.f32 %v646_v20, %v495_v1  ;;  %v2372_v28 = vpop.f32.mrb[1].mxu1 }
 0x1eb   :  { %v750_v11 = vpop.f32.mrb[2].mxu0 }
 0x1ec   :  { %v751_v27 = vadd.f32 %v750_v11, %v647_v25  ;;  %v2407_v34 = vpop.f32.mrb[3].mxu0 }
 0x1f3   :  { %v839_v46 = vpop.f32.mrb[2].mxu1 }
 0x1f4   :  { %v840_v14 = vadd.f32 %v839_v46, %v751_v27  ;;  %v2442_v40 = vpop.f32.mrb[3].mxu1 }
 0x20b   :  { %v958_v63 = vpop.f32.mrb[4].mxu0 }
 0x20c   :  { %v959_v8 = vadd.f32 %v958_v63, %v840_v14  ;;  %v2477_v37 = vpop.f32.mrb[5].mxu0 }
 0x213   :  { %v1045_v19 = vpop.f32.mrb[4].mxu1 }
 0x214   :  { %v1046_v6 = vadd.f32 %v1045_v19, %v959_v8  ;;  %v2512_v35 = vpop.f32.mrb[5].mxu1 }
 0x216   :  { %v1050_v33 = vadd.f32 %v1049_v15, %v1046_v6 }
 0x218   :  { %1051 = vst [vmem:[#allocation2] sm:$0x1] %v1050_v33 }
 0x22b   :  { %v1511_v30 = vpop.f32.mrb[6].mxu0 }
 0x22c   :  { %v2547_v16 = vpop.f32.mrb[7].mxu0 }
 0x233   :  { %v1662_v2 = vpop.f32.mrb[6].mxu1 }
 0x234   :  { %v1663_v29 = vadd.f32 %v1662_v2, %v1511_v30  ;;  %v2582_v51 = vpop.f32.mrb[7].mxu1 }
 0x24b   :  { %v1766_v56 = vpop.f32.mrb[8].mxu0 }
 0x24c   :  { %v1767_v10 = vadd.f32 %v1766_v56, %v1663_v29  ;;  %v2617_v55 = vpop.f32.mrb[9].mxu0 }
 0x253   :  { %v1855_v58 = vpop.f32.mrb[8].mxu1 }
 0x254   :  { %v1856_v32 = vadd.f32 %v1855_v58, %v1767_v10  ;;  %v2652_v53 = vpop.f32.mrb[9].mxu1 }
 0x26b   :  { %v1974_v57 = vpop.f32.mrb[10].mxu0 }
 0x26c   :  { %v1975_v52 = vadd.f32 %v1974_v57, %v1856_v32  ;;  %v2687_v23 = vpop.f32.mrb[11].mxu0 }
 0x273   :  { %v2061_v26 = vpop.f32.mrb[10].mxu1 }
 0x274   :  { %v2062_v36 = vadd.f32 %v2061_v26, %v1975_v52  ;;  %v2722_v24 = vpop.f32.mrb[11].mxu1 }
 0x276   :  { %v2066_v4 = vadd.f32 %v2065_v22, %v2062_v36 }
 0x278   :  { %2067 = vst [vmem:[#allocation2 + $0x1] sm:$0x1] %v2066_v4 }
 0x279   :  { %3193 = shalt.err (!%p3190_p4)
}
 0x27a   :  { %s3194_s10 = scalar_lea.hbm %s4246_s4, 32 }
 0x27b   :  { %p3195_p5 = scmp.ne.s32.totalorder %s4246_s4, %s3194_s10  ;;  %p3198_p6 = scmp.lt.u32.totalorder %s3194_s10, %s4246_s4 }
 0x27d   :  { %p3200_p7 = pnand %p3198_p6, %p3195_p5 }
 0x27f   :  { %3203 = shalt.err (!%p3200_p7)
}
 0x280   :  { %2077 = dma.vmem_to_hbm [thread:$0]  %s2075_s6, 32, %s4246_s4, [#allocation3]  }
 0x281   :  { %3204 = dma.done.wait [#allocation3], 32  }
 0x282   :  { %3205 = vsyncadd [#allocation3], 4294967264 }
 0x283   :  { %2081 = vsyncpa [#allocation3], 1 }

</bundles_post_ra>
